<compile_context>
chip_gen: v7x
topology: tpu7x:2x2x1
jax: 0.10.0
libtpu: 0.0.40
codegen_flags: <defaults>
</compile_context>

<pallas_src>
import functools

import jax
import jax.numpy as jnp
from jax.experimental import pallas as pl
from jax.experimental.pallas import tpu as pltpu


def _apply_act(y, act):
    if act == "relu":
        return jnp.maximum(y, 0.0)
    if act == "hard_swish":
        # x * relu6(x + 3) / 6
        return y * jnp.clip(y + 3.0, 0.0, 6.0) * (1.0 / 6.0)
    if act is None:
        return y
    raise ValueError(f"unknown act: {act}")


def _slab(x_ref, r0, i, j, toh, ow, stride):
    # (toh, ow, Cin) input window for kernel tap (i, j) of this row tile.
    if stride == 1:
        return x_ref[0, pl.ds(r0 + i, toh), pl.ds(j, ow), :]
    return x_ref[0, pl.ds(r0 + i, toh, stride=stride),
                 pl.ds(j, ow, stride=stride), :]


# ------------------------- fused-taps kernel (small Cin) ----------------------
def _conv_bn_act_kernel_fused(x_ref, w_ref, b_ref, o_ref, *,
                              kh, kw, stride, toh, ow, act):
    # x_ref: (1, HP, WP, Cin)          bf16 padded input image (whole image resident)
    # w_ref: (KH*KW*Cin, TCO)          bf16 weights, BN scale folded
    # b_ref: (1, TCO)                  f32  BN bias
    # o_ref: (1, 1, TOH*OW, TCO)       bf16 output tile (unpadded Cout)
    t = pl.program_id(1)
    r0 = pl.multiple_of(t * (toh * stride), toh * stride)
    cin = x_ref.shape[3]

    # Build the im2col patch for this row tile by concatenating the KH*KW shifted
    # slabs along the lane dim (K = KH*KW*Cin), then do ONE MXU matmul.
    slabs = []
    for i in range(kh):                       # static, unrolled (KH*KW small)
        for j in range(kw):
            slabs.append(_slab(x_ref, r0, i, j, toh, ow, stride))
    # NOTE: the (toh, ow, K) -> (toh*ow, K) merge is a free relayout when ow % 8 == 0.
    patch = jnp.concatenate(slabs, axis=-1).reshape(toh * ow, kh * kw * cin)

    acc = jnp.dot(patch, w_ref[...], preferred_element_type=jnp.float32)
    y = _apply_act(acc + b_ref[...], act)     # f32 epilogue (v5e-safe)
    o_ref[0, 0, :, :] = y.astype(o_ref.dtype)


# ------------------------- per-tap kernel (large Cin) --------------------------
def _conv_bn_act_kernel_taps(x_ref, w_ref, b_ref, o_ref, acc_ref, *,
                             kh, kw, stride, toh, ow, act):
    # w_ref: (KH*KW, Cin, TCO) bf16;  acc_ref: (TOH*OW, TCO) f32 VMEM scratch.
    t = pl.program_id(1)
    r0 = pl.multiple_of(t * (toh * stride), toh * stride)
    cin = x_ref.shape[3]

    acc_ref[...] = jnp.zeros_like(acc_ref)
    for i in range(kh):
        for j in range(kw):
            patch = _slab(x_ref, r0, i, j, toh, ow, stride).reshape(toh * ow, cin)
            acc_ref[...] += jnp.dot(patch, w_ref[i * kw + j],
                                    preferred_element_type=jnp.float32)

    y = _apply_act(acc_ref[...] + b_ref[...], act)
    o_ref[0, 0, :, :] = y.astype(o_ref.dtype)


# ------------------------------ JAX glue ---------------------------------------
def conv_bn_act(x_nchw, conv_w, gamma, beta, running_mean, running_var,
                *, stride=1, padding=0, eps=1e-5, act=None,
                target_rows=256, compute_dtype=jnp.bfloat16, out_dtype=jnp.bfloat16):
    """ConvBNACT forward (eval-mode BN).  x_nchw: (N, Cin, H, W), conv_w: (Cout, Cin, KH, KW)."""
    n, cin, h, w = x_nchw.shape
    cout, cin_w, kh, kw = conv_w.shape
    assert cin == cin_w, "groups != 1 not implemented"  # TODO(synk): grouped conv

    oh = (h + 2 * padding - kh) // stride + 1
    ow = (w + 2 * padding - kw) // stride + 1

    # Fuse the KH*KW taps into one matmul when Cin is far below the MXU K width.
    kdim = kh * kw * cin
    fuse = cin < 128
    if fuse:
        # Keep the live im2col patch around ~96 KB so it stays in vregs.
        target_rows = min(target_rows, max(ow, (96 * 1024) // max(2 * kdim, 1)))

    # Row tile: ~target_rows implicit-GEMM rows per grid step (live block <= ~128 KB).
    toh = max(1, min(oh, max(1, target_rows // max(ow, 1))))
    nt = pl.cdiv(oh, toh)

    # Cout tiling: unpadded when small (<=128); tiles of 128 lanes otherwise.
    if cout <= 128:
        tco, coutp = cout, cout
    else:
        tco = 128
        coutp = ((cout + 127) // 128) * 128
    nco = coutp // tco

    # NCHW -> NHWC, spatial zero-pad (+ extra bottom rows so the last row tile is in-bounds).
    hp_need = (nt * toh - 1) * stride + kh
    hp = max(h + 2 * padding, hp_need)
    wp = w + 2 * padding
    x_nhwc = jnp.transpose(x_nchw, (0, 2, 3, 1))
    x_pad = jnp.pad(
        x_nhwc,
        ((0, 0), (padding, hp - h - padding), (padding, padding), (0, 0)),
    ).astype(compute_dtype)

    # Fold eval-mode BN scale into the weights; pass only the per-channel bias.
    scale = gamma / jnp.sqrt(running_var + eps)                       # (Cout,)
    bias = beta - running_mean * scale                                # (Cout,)
    w_hwio = jnp.transpose(conv_w, (2, 3, 1, 0)) * scale[None, None, None, :]

    if fuse:
        w_mat = w_hwio.reshape(kdim, cout)
        w_mat = jnp.pad(w_mat, ((0, 0), (0, coutp - cout))).astype(compute_dtype)
        w_spec = pl.BlockSpec((kdim, tco), lambda b, t, c: (0, c))
        kernel = functools.partial(_conv_bn_act_kernel_fused, kh=kh, kw=kw,
                                   stride=stride, toh=toh, ow=ow, act=act)
        scratch_shapes = ()
    else:
        w_mat = w_hwio.reshape(kh * kw, cin, cout)
        w_mat = jnp.pad(w_mat, ((0, 0), (0, 0), (0, coutp - cout))).astype(compute_dtype)
        w_spec = pl.BlockSpec((kh * kw, cin, tco), lambda b, t, c: (0, 0, c))
        kernel = functools.partial(_conv_bn_act_kernel_taps, kh=kh, kw=kw,
                                   stride=stride, toh=toh, ow=ow, act=act)
        scratch_shapes = (pltpu.VMEM((toh * ow, tco), jnp.float32),)

    b_vec = jnp.pad(bias, (0, coutp - cout)).reshape(1, coutp).astype(jnp.float32)
    b_spec = pl.BlockSpec((1, tco), lambda b, t, c: (0, c))

    out_itemsize = jnp.dtype(out_dtype).itemsize
    cdt_itemsize = jnp.dtype(compute_dtype).itemsize

    # Honest cost hint: real FLOPs (no pad) and real (bf16, cout-only) writeback.
    flops = 2 * n * oh * ow * kh * kw * cin * cout
    bytes_accessed = (int(x_pad.size) * cdt_itemsize
                      + int(w_mat.size) * cdt_itemsize
                      + int(b_vec.size) * 4
                      + n * oh * ow * cout * out_itemsize)

    # VMEM budget: double-buffered image/weight/out blocks + scratch + patch slack.
    vmem_est = (2 * hp * wp * cin * cdt_itemsize
                + 2 * int(w_mat.size) * cdt_itemsize
                + 2 * coutp * 4
                + 2 * toh * ow * tco * out_itemsize
                + toh * ow * tco * 4
                + toh * ow * kdim * cdt_itemsize)
    vmem_limit = int(min(max(int(vmem_est * 1.5) + (4 << 20), 32 << 20), 128 << 20))

    out = pl.pallas_call(
        kernel,
        out_shape=jax.ShapeDtypeStruct((n, nt, toh * ow, coutp), out_dtype),
        grid=(n, nt, nco),
        in_specs=[
            # Whole padded image per batch element; block index is constant in the
            # row-tile / cout axes so Pallas does not re-fetch it across those steps.
            pl.BlockSpec((1, hp, wp, cin), lambda b, t, c: (b, 0, 0, 0)),
            w_spec,
            b_spec,
        ],
        out_specs=pl.BlockSpec((1, 1, toh * ow, tco), lambda b, t, c: (b, t, 0, c)),
        scratch_shapes=list(scratch_shapes),
        compiler_params=pltpu.CompilerParams(
            dimension_semantics=("parallel", "parallel", "parallel"),
            vmem_limit_bytes=vmem_limit),
        cost_estimate=pl.CostEstimate(flops=int(flops), transcendentals=0,
                                      bytes_accessed=int(bytes_accessed)),
    )(x_pad, w_mat, b_vec)

    # (N, T, TOH*OW, CoutP) -> (N, OH, OW, Cout) -> NCHW.  The reshape is free
    # (contiguous); the transpose is the single unavoidable pass to match the
    # module's NCHW output.  Keep NHWC end-to-end if the surrounding model allows.
    out = out.reshape(n, nt * toh, ow, coutp)[:, :oh, :, :cout]
    return jnp.transpose(out, (0, 3, 1, 2))


# ------------------------------ reference --------------------------------------
def _reference(x, conv_w, gamma, beta, mean, var, *, stride, padding, eps, act):
    y = jax.lax.conv_general_dilated(
        x, conv_w, window_strides=(stride, stride),
        padding=[(padding, padding), (padding, padding)],
        dimension_numbers=("NCHW", "OIHW", "NCHW"))
    s = gamma / jnp.sqrt(var + eps)
    b = beta - mean * s
    y = y * s[None, :, None, None] + b[None, :, None, None]
    if act == "relu":
        y = jnp.maximum(y, 0.0)
    elif act == "hard_swish":
        y = y * jnp.clip(y + 3.0, 0.0, 6.0) / 6.0
    return y


# -------------------------------- main ------------------------------------------
if __name__ == "__main__":
    # Module config: ConvBNACT(in=4, out=8, kernel_size=3, stride=1, padding=1, act='hard_swish')
    N, CIN, H, W = 2, 4, 16, 16
    COUT, KH, KW = 8, 3, 3
    STRIDE, PAD, EPS, ACT = 1, 1, 1e-5, "hard_swish"

    key = jax.random.PRNGKey(0)
    kx, kw_, kg, kb, km, kv = jax.random.split(key, 6)

    x = jax.random.normal(kx, (N, CIN, H, W), dtype=jnp.float32)
    conv_w = 0.1 * jax.random.normal(kw_, (COUT, CIN, KH, KW), dtype=jnp.float32)
    gamma = 1.0 + 0.1 * jax.random.normal(kg, (COUT,), dtype=jnp.float32)
    beta = 0.1 * jax.random.normal(kb, (COUT,), dtype=jnp.float32)
    running_mean = 0.1 * jax.random.normal(km, (COUT,), dtype=jnp.float32)
    running_var = 1.0 + 0.1 * jax.nn.softplus(jax.random.normal(kv, (COUT,), dtype=jnp.float32))

    out = conv_bn_act(x, conv_w, gamma, beta, running_mean, running_var,
                      stride=STRIDE, padding=PAD, eps=EPS, act=ACT)
    out = jax.block_until_ready(out)

    ref = _reference(x, conv_w, gamma, beta, running_mean, running_var,
                     stride=STRIDE, padding=PAD, eps=EPS, act=ACT)
    assert out.shape == (N, COUT, H, W), out.shape
    # bf16 matmul inputs + bf16 output vs f32 reference -> 3e-2 tolerance.
    out_f32 = out.astype(jnp.float32)
    max_err = float(jnp.max(jnp.abs(out_f32 - ref)))
    assert jnp.allclose(out_f32, ref, rtol=3e-2, atol=3e-2), max_err

    print("KERNEL_OK")
</pallas_src>

<mosaic_0001>
module attributes {stable_mosaic.version = 11 : i64} {
  func.func @_conv_bn_act_kernel_fused(%arg0: i32, %arg1: i32, %arg2: i32, %arg3: memref<1x18x18x4xbf16, #tpu.memory_space<vmem>>, %arg4: memref<36x8xbf16, #tpu.memory_space<vmem>>, %arg5: memref<1x8xf32, #tpu.memory_space<vmem>>, %arg6: memref<1x1x256x8xbf16, #tpu.memory_space<vmem>>) attributes {dimension_semantics = [#tpu.dimension_semantics<parallel>, #tpu.dimension_semantics<parallel>, #tpu.dimension_semantics<parallel>], iteration_bounds = array<i64: 2, 1, 1>, scalar_prefetch = 0 : i64, scratch_operands = 0 : i64, tpu.core_type = #tpu.core_type<tc>, window_params = [{transform_indices = @transform_0, window_bounds = array<i64: 1, 18, 18, 4>}, {transform_indices = @transform_1, window_bounds = array<i64: 36, 8>}, {transform_indices = @transform_2, window_bounds = array<i64: 1, 8>}, {transform_indices = @transform_3, window_bounds = array<i64: 1, 1, 256, 8>}]} {
    %c16_i32 = arith.constant 16 : i32
    %0 = arith.muli %arg1, %c16_i32 : i32
    %1 = tpu.assume_multiple %0, 16 : i32
    %c0_i32 = arith.constant 0 : i32
    %2 = arith.addi %1, %c0_i32 : i32
    %c0 = arith.constant 0 : index
    %3 = arith.index_cast %2 : i32 to index
    %c0_0 = arith.constant 0 : index
    %c0_1 = arith.constant 0 : index
    %4 = vector.load %arg3[%c0, %3, %c0_0, %c0_1] : memref<1x18x18x4xbf16, #tpu.memory_space<vmem>>, vector<1x16x16x4xbf16>
    %5 = vector.shape_cast %4 : vector<1x16x16x4xbf16> to vector<16x16x4xbf16>
    %c0_i32_2 = arith.constant 0 : i32
    %6 = arith.addi %1, %c0_i32_2 : i32
    %c0_3 = arith.constant 0 : index
    %7 = arith.index_cast %6 : i32 to index
    %c1 = arith.constant 1 : index
    %c0_4 = arith.constant 0 : index
    %8 = vector.load %arg3[%c0_3, %7, %c1, %c0_4] : memref<1x18x18x4xbf16, #tpu.memory_space<vmem>>, vector<1x16x16x4xbf16>
    %9 = vector.shape_cast %8 : vector<1x16x16x4xbf16> to vector<16x16x4xbf16>
    %c0_i32_5 = arith.constant 0 : i32
    %10 = arith.addi %1, %c0_i32_5 : i32
    %c0_6 = arith.constant 0 : index
    %11 = arith.index_cast %10 : i32 to index
    %c2 = arith.constant 2 : index
    %c0_7 = arith.constant 0 : index
    %12 = vector.load %arg3[%c0_6, %11, %c2, %c0_7] : memref<1x18x18x4xbf16, #tpu.memory_space<vmem>>, vector<1x16x16x4xbf16>
    %13 = vector.shape_cast %12 : vector<1x16x16x4xbf16> to vector<16x16x4xbf16>
    %c1_i32 = arith.constant 1 : i32
    %14 = arith.addi %1, %c1_i32 : i32
    %c0_8 = arith.constant 0 : index
    %15 = arith.index_cast %14 : i32 to index
    %c0_9 = arith.constant 0 : index
    %c0_10 = arith.constant 0 : index
    %16 = vector.load %arg3[%c0_8, %15, %c0_9, %c0_10] : memref<1x18x18x4xbf16, #tpu.memory_space<vmem>>, vector<1x16x16x4xbf16>
    %17 = vector.shape_cast %16 : vector<1x16x16x4xbf16> to vector<16x16x4xbf16>
    %c1_i32_11 = arith.constant 1 : i32
    %18 = arith.addi %1, %c1_i32_11 : i32
    %c0_12 = arith.constant 0 : index
    %19 = arith.index_cast %18 : i32 to index
    %c1_13 = arith.constant 1 : index
    %c0_14 = arith.constant 0 : index
    %20 = vector.load %arg3[%c0_12, %19, %c1_13, %c0_14] : memref<1x18x18x4xbf16, #tpu.memory_space<vmem>>, vector<1x16x16x4xbf16>
    %21 = vector.shape_cast %20 : vector<1x16x16x4xbf16> to vector<16x16x4xbf16>
    %c1_i32_15 = arith.constant 1 : i32
    %22 = arith.addi %1, %c1_i32_15 : i32
    %c0_16 = arith.constant 0 : index
    %23 = arith.index_cast %22 : i32 to index
    %c2_17 = arith.constant 2 : index
    %c0_18 = arith.constant 0 : index
    %24 = vector.load %arg3[%c0_16, %23, %c2_17, %c0_18] : memref<1x18x18x4xbf16, #tpu.memory_space<vmem>>, vector<1x16x16x4xbf16>
    %25 = vector.shape_cast %24 : vector<1x16x16x4xbf16> to vector<16x16x4xbf16>
    %c2_i32 = arith.constant 2 : i32
    %26 = arith.addi %1, %c2_i32 : i32
    %c0_19 = arith.constant 0 : index
    %27 = arith.index_cast %26 : i32 to index
    %c0_20 = arith.constant 0 : index
    %c0_21 = arith.constant 0 : index
    %28 = vector.load %arg3[%c0_19, %27, %c0_20, %c0_21] : memref<1x18x18x4xbf16, #tpu.memory_space<vmem>>, vector<1x16x16x4xbf16>
    %29 = vector.shape_cast %28 : vector<1x16x16x4xbf16> to vector<16x16x4xbf16>
    %c2_i32_22 = arith.constant 2 : i32
    %30 = arith.addi %1, %c2_i32_22 : i32
    %c0_23 = arith.constant 0 : index
    %31 = arith.index_cast %30 : i32 to index
    %c1_24 = arith.constant 1 : index
    %c0_25 = arith.constant 0 : index
    %32 = vector.load %arg3[%c0_23, %31, %c1_24, %c0_25] : memref<1x18x18x4xbf16, #tpu.memory_space<vmem>>, vector<1x16x16x4xbf16>
    %33 = vector.shape_cast %32 : vector<1x16x16x4xbf16> to vector<16x16x4xbf16>
    %c2_i32_26 = arith.constant 2 : i32
    %34 = arith.addi %1, %c2_i32_26 : i32
    %c0_27 = arith.constant 0 : index
    %35 = arith.index_cast %34 : i32 to index
    %c2_28 = arith.constant 2 : index
    %c0_29 = arith.constant 0 : index
    %36 = vector.load %arg3[%c0_27, %35, %c2_28, %c0_29] : memref<1x18x18x4xbf16, #tpu.memory_space<vmem>>, vector<1x16x16x4xbf16>
    %37 = vector.shape_cast %36 : vector<1x16x16x4xbf16> to vector<16x16x4xbf16>
    %38 = tpu.concatenate %5, %9, %13, %17, %21, %25, %29, %33, %37 in 2 : vector<16x16x4xbf16>, vector<16x16x4xbf16>, vector<16x16x4xbf16>, vector<16x16x4xbf16>, vector<16x16x4xbf16>, vector<16x16x4xbf16>, vector<16x16x4xbf16>, vector<16x16x4xbf16>, vector<16x16x4xbf16> -> vector<16x16x36xbf16>
    %39 = vector.shape_cast %38 : vector<16x16x36xbf16> to vector<256x36xbf16>
    %c0_30 = arith.constant 0 : index
    %c0_31 = arith.constant 0 : index
    %40 = vector.load %arg4[%c0_30, %c0_31] : memref<36x8xbf16, #tpu.memory_space<vmem>>, vector<36x8xbf16>
    %cst = arith.constant dense<0.000000e+00> : vector<256x8xf32>
    %41 = tpu.matmul %39, %40, %cst {dimension_numbers = #tpu.dot_dimension_numbers<[1], [0], [0], [1], [0, 0, 1, 1], [], []>} : vector<256x36xbf16>, vector<36x8xbf16>, vector<256x8xf32> -> vector<256x8xf32>
    %c0_32 = arith.constant 0 : index
    %c0_33 = arith.constant 0 : index
    %42 = vector.load %arg5[%c0_32, %c0_33] : memref<1x8xf32, #tpu.memory_space<vmem>>, vector<1x8xf32>
    %43 = vector.broadcast %42 : vector<1x8xf32> to vector<256x8xf32>
    %44 = arith.addf %41, %43 : vector<256x8xf32>
    %cst_34 = arith.constant 3.000000e+00 : f32
    %45 = vector.broadcast %cst_34 : f32 to vector<256x8xf32>
    %46 = arith.addf %44, %45 : vector<256x8xf32>
    %cst_35 = arith.constant 0.000000e+00 : f32
    %cst_36 = arith.constant 6.000000e+00 : f32
    %47 = vector.broadcast %cst_35 : f32 to vector<256x8xf32>
    %48 = arith.maximumf %47, %46 : vector<256x8xf32>
    %49 = vector.broadcast %cst_36 : f32 to vector<256x8xf32>
    %50 = arith.minimumf %49, %48 : vector<256x8xf32>
    %51 = arith.mulf %44, %50 : vector<256x8xf32>
    %cst_37 = arith.constant 0.166666672 : f32
    %52 = vector.broadcast %cst_37 : f32 to vector<256x8xf32>
    %53 = arith.mulf %51, %52 : vector<256x8xf32>
    %54 = arith.truncf %53 : vector<256x8xf32> to vector<256x8xbf16>
    %c0_38 = arith.constant 0 : index
    %c0_39 = arith.constant 0 : index
    %c0_40 = arith.constant 0 : index
    %c0_41 = arith.constant 0 : index
    %55 = vector.load %arg6[%c0_38, %c0_39, %c0_40, %c0_41] : memref<1x1x256x8xbf16, #tpu.memory_space<vmem>>, vector<1x1x256x8xbf16>
    %56 = vector.shape_cast %55 : vector<1x1x256x8xbf16> to vector<256x8xbf16>
    %57 = vector.shape_cast %54 : vector<256x8xbf16> to vector<1x1x256x8xbf16>
    tpu.vector_store %arg6[%c0_38, %c0_39, %c0_40, %c0_41], %57 {strides = array<i32>} : memref<1x1x256x8xbf16, #tpu.memory_space<vmem>>, vector<1x1x256x8xbf16>,
    return
  }
  func.func @transform_0(%arg0: i32, %arg1: i32, %arg2: i32) -> (i32, i32, i32, i32) {
    %c0_i32 = arith.constant 0 : i32
    %c0_i32_0 = arith.constant 0 : i32
    %c0_i32_1 = arith.constant 0 : i32
    %c0_i32_2 = arith.constant 0 : i32
    return %arg0, %c0_i32, %c0_i32_0, %c0_i32_1 : i32, i32, i32, i32
  }
  func.func @transform_1(%arg0: i32, %arg1: i32, %arg2: i32) -> (i32, i32) {
    %c0_i32 = arith.constant 0 : i32
    %c0_i32_0 = arith.constant 0 : i32
    return %c0_i32, %arg2 : i32, i32
  }
  func.func @transform_2(%arg0: i32, %arg1: i32, %arg2: i32) -> (i32, i32) {
    %c0_i32 = arith.constant 0 : i32
    %c0_i32_0 = arith.constant 0 : i32
    return %c0_i32, %arg2 : i32, i32
  }
  func.func @transform_3(%arg0: i32, %arg1: i32, %arg2: i32) -> (i32, i32, i32, i32) {
    %c0_i32 = arith.constant 0 : i32
    %c0_i32_0 = arith.constant 0 : i32
    return %arg0, %arg1, %c0_i32, %arg2 : i32, i32, i32, i32
  }
}

</mosaic_0001>

<bundles_post_ra>
// kernel: tpu_custom_call.1
= control target key start
LH: loop header
LB: loop body
LE: loop exit
PB: predicated region body
PF: predicated region fallthrough
CT: control target
= control target key end

     0   :  { %s3560_s12 = smov 0   ;;  %s3562_s13 = smov 0   ;;  %s4909_s0 = inlined_call_operand.vmem [shape: bf16[2,18,18,4], index: 0, kind: input, shape index: {}]   ;;  %s4910_s1 = inlined_call_operand.vmem [shape: bf16[36,8], index: 1, kind: input, shape index: {}]   ;;  %s4911_s2 = inlined_call_operand.vmem [shape: f32[1,8], index: 2, kind: input, shape index: {}]   ;;  %s4912_s3 = inlined_call_operand.vmem [shape: bf16[2,1,256,8], index: 3, kind: output, shape index: {}]  }
   0x1   :  { %s3564_s14 = smov 0  }
   0x2 LB: > { %s32_s15 = sadd.s32 1, %s3526_s13  ;;  %p2900_p0 = scmp.ge.s32.totalorder %s3530_s14, 1  ;;  %s3530_s14 = sphi %s3564_s14, %s13_s14   ;;  %s3526_s13 = sphi %s3562_s13, %s4926_s13   ;;  %s3522_s12 = sphi %s3560_s12, %s4925_s12  }
   0x3   : > { %p34_p1 = scmp.ge.s32.totalorder %s32_s15, 2  ;;  %p177_p2 = scmp.lt.s32.totalorder %s3530_s14, 3 }
   0x5   : > { %s4928_s15 = smov (%p34_p1, %s32_s15), 0  ;;  %p178_p3 = pnand %p2900_p0, %p177_p2 }
   0x7   : > { %181 = sbr.rel (%p178_p3) target bundleno = 624 (0x270), region = 32 }
   0xe   : > { %p215_p4 = scmp.lt.s32.totalorder %s3522_s12, 1  ;;  %s3532_s20 = smov 12   ;;  %vm845_vm0 = vcmask 1046528   ;;  %vm572_vm1 = vsmask.f32 7424  ;;  %vm2274_vm2 = vcmask 1041408  }
   0xf   : > { %s3533_s21 = smov 8   ;;  %s3534_s22 = smov 4   ;;  %vm1950_vm3 = vcmask 31744   ;;  %vm1983_vm4 = vcmask 64512   ;;  %vm2016_vm5 = vcmask 97280   ;;  %vm2049_vm6 = vcmask 130048  }
  0x10   : > { %s4930_s12 = smov (!%p215_p4, %s3522_s12), 1  ;;  %s3535_s23 = smov 16   ;;  %vm2082_vm7 = vcmask 162816   ;;  %vm2115_vm8 = vcmask 195584   ;;  %vm2148_vm9 = vcmask 228352   ;;  %vm2181_vm10 = vcmask 261120  }
  0x11   : > { %s3328_s16 = smul.u32 216, %s4930_s12  ;;  %s3536_s24 = smov 20   ;;  %vm2241_vm11 = vcmask 293888   ;;  %vm2727_vm12 = vcmask 60416  }
  0x12   : > { %s3537_s27 = smov 24   ;;  %s3538_s30 = smov 28  }
  0x13   : > { %s3584_s19 = scalar_lea.vmem %s4909_s0, %s3328_s16  ;;  %s3539_s4 = smov 32  }
  0x14   : > { %v2920_v0 = vld [vmem:[%s3584_s19 + $0x6c] sm:$0xf]  ;;  %v3588_v1 = vld [vmem:[%s3584_s19 + $0x70] sm:$0xf]  ;;  %v261_v6 = vld [vmem:[%s3584_s19 + $0x64] sm:$0xf] }
  0x15   : > { %v3591_v2 = vcombine.low %v2920_v0, %v3588_v1  ;;  %v2904_v3 = vld [vmem:[%s3584_s19 + $0xc] sm:$0xf]  ;;  %v3595_v4 = vld [vmem:[%s3584_s19 + $0x10] sm:$0xf]  ;;  %v300_v7 = vld [vmem:[%s3584_s19 + $0x60] sm:$0xe] }
  0x16   : > { %v3598_v5 = vcombine.low %v2904_v3, %v3595_v4  ;;  %v3605_v8 = vld [vmem:[%s3584_s19 + $0x68] ss:$0 sps:$4 sm:$0x11]   ;;  %v3072_v9 = vcombine.low %v300_v7, %v261_v6  ;;  %v260_v10 = vld [vmem:[%s3584_s19 + $0x60] sm:$0xf]  ;;  %s3230_s9 = sshll.u32 %s4930_s12, 7 }
  0x17   : > { %1022 = vrot.lane.b32.xlu1 %v3591_v2, %s3532_s20  ;;  %v1185_v11 = vshll.u32 %v3591_v2, 16  ;;  %v245_v12 = vld [vmem:[%s3584_s19 + $0x4] sm:$0xf]  ;;  %v871_v14 = vrot.slane %v3605_v8, 1  ;;  %v292_v15 = vld [vmem:[%s3584_s19] sm:$0xe]  ;;  %v3616_v18 = vcombine.low %v260_v10, %v261_v6  ;;  %s4810_s16 = scalar_lea.vmem %s4912_s3, %s3230_s9 }
  0x18   : > { %1006 = vrot.lane.b32.xlu0 %v3598_v5, %s3532_s20  ;;  %v870_v13 = vrot.slane %v3072_v9, 1  ;;  %v244_v16 = vld [vmem:[%s3584_s19] sm:$0xf]  ;;  %v1089_v17 = vshll.u32 %v3598_v5, 16  ;;  %v3064_v20 = vcombine.low %v292_v15, %v245_v12  ;;  %v262_v21 = vld [vmem:[%s3584_s19 + $0x6c] sm:$0xf] }
  0x19   : > { %v3368_v19 = vld [vmem:[%s3584_s19 + $0x8] ss:$0 sps:$4 sm:$0x11]   ;;  %v3621_v23 = vcombine.low %v244_v16, %v245_v12  ;;  %v263_v24 = vld [vmem:[%s3584_s19 + $0x70] sm:$0xf]  ;;  %v670_v30 = vshrl.u32 %v3616_v18, 16 }
  0x1a   : > { %v872_v22 = vsel %vm845_vm0, %v870_v13, %v871_v14  ;;  %v301_v25 = vld [vmem:[%s3584_s19 + $0x6c] sm:$0xe]  ;;  %v846_v26 = vrot.slane %v3064_v20, 1  ;;  %v847_v27 = vrot.slane %v3368_v19, 1  ;;  %v3628_v31 = vcombine.low %v262_v21, %v263_v24  ;;  %v247_v33 = vld [vmem:[%s3584_s19 + $0x10] sm:$0xf] }
  0x1b   : > { %910 = vrot.lane.b32.xlu1 %v872_v22, %s3533_s21  ;;  %v3372_v28 = vld [vmem:[%s3584_s19 + $0x74] ss:$0 sps:$4 sm:$0x11]   ;;  %v3073_v29 = vcombine.low %v301_v25, %v263_v24  ;;  %v246_v32 = vld [vmem:[%s3584_s19 + $0xc] sm:$0xf]  ;;  %v574_v41 = vshrl.u32 %v3621_v23, 16 }
  0x1c   : > { %v848_v34 = vsel %vm845_vm0, %v846_v26, %v847_v27  ;;  %v874_v36 = vrot.slane %v3372_v28, 1  ;;  %v293_v37 = vld [vmem:[%s3584_s19 + $0xc] sm:$0xe]  ;;  %v3634_v38 = vcombine.low %v246_v32, %v247_v33  ;;  %v3375_v39 = vld [vmem:[%s3584_s19 + $0x14] ss:$0 sps:$4 sm:$0x11]  }
  0x1d   : > { %v873_v35 = vrot.slane %v3073_v29, 1  ;;  %894 = vrot.lane.b32.xlu0 %v848_v34, %s3533_s21  ;;  %v3065_v40 = vcombine.low %v293_v37, %v247_v33  ;;  %v576_v42 = vshll.u32 %v3621_v23, 16  ;;  %v581_v43 = vshll.u32 %v3368_v19, 16  ;;  %v2922_v52 = vld [vmem:[%s3584_s19 + $0x78] sm:$0xf] }
  0x1e   : > { %v586_v45 = vshrl.u32 %v3634_v38, 16  ;;  %v588_v46 = vshll.u32 %v3634_v38, 16  ;;  %v682_v47 = vshrl.u32 %v3628_v31, 16  ;;  %v850_v49 = vrot.slane %v3375_v39, 1  ;;  %v3648_v57 = vld [vmem:[%s3584_s19 + $0x7c] sm:$0xf] }
  0x1f   : > { %v875_v44 = vsel %vm845_vm0, %v873_v35, %v874_v36  ;;  %v849_v48 = vrot.slane %v3065_v40, 1  ;;  %v593_v50 = vshll.u32 %v3375_v39, 16  ;;  %v578_v51 = vrot.slane %v576_v42, 1  ;;  %v2906_v62 = vld [vmem:[%s3584_s19 + $0x18] sm:$0xf] }
  0x20   : > { %912 = vrot.lane.b32.xlu1 %v875_v44, %s3533_s21  ;;  %v590_v53 = vrot.slane %v588_v46, 1  ;;  %v583_v54 = vrot.slane %v581_v43, 1  ;;  %v684_v55 = vshll.u32 %v3628_v31, 16  ;;  %v689_v56 = vshll.u32 %v3372_v28, 16  ;;  %v3654_v63 = vld [vmem:[%s3584_s19 + $0x1c] sm:$0xf] }
  0x21   : > { %v851_v58 = vsel %vm845_vm0, %v849_v48, %v850_v49  ;;  %v595_v59 = vrot.slane %v593_v50, 1  ;;  %v579_v60 = vor.u32 %v578_v51, %v574_v41  ;;  %v672_v61 = vshll.u32 %v3616_v18, 16  ;;  %v3661_v13 = vld [vmem:[%s3584_s19 + $0x74] ss:$0 sps:$4 sm:$0x11]  }
  0x22   : > { %896 = vrot.lane.b32.xlu0 %v851_v58, %s3533_s21  ;;  %v591_v0 = vor.u32 %v590_v53, %v586_v45  ;;  %v686_v3 = vrot.slane %v684_v55, 1  ;;  %v691_v6 = vrot.slane %v689_v56, 1  ;;  %v677_v7 = vshll.u32 %v3605_v8, 16  ;;  %v3666_v20 = vld [vmem:[%s3584_s19 + $0x14] ss:$0 sps:$4 sm:$0x11]  }
  0x23   : > { %v584_v9 = vsel %vm572_vm1, %v579_v60, %v583_v54  ;;  %v674_v10 = vrot.slane %v672_v61, 1  ;;  %v3089_v12 = vcombine.low %v2922_v52, %v3648_v57  ;;  %v3081_v19 = vcombine.low %v2906_v62, %v3654_v63  ;;  %v3673_v24 = vld [vmem:[%s3584_s19 + $0x80] ss:$0 sps:$4 sm:$0x11]   ;;  %v2960_v40 = vld [vmem:[%s3584_s19 + $0x6c] sm:$0xe] }
  0x24   : > { %v596_v14 = vsel %vm572_vm1, %v591_v0, %v595_v59  ;;  %v687_v15 = vor.u32 %v686_v3, %v682_v47  ;;  %v679_v16 = vrot.slane %v677_v7, 1  ;;  %v1183_v21 = vshrl.u32 %v3591_v2, 16  ;;  %v2952_v43 = vld [vmem:[%s3584_s19 + $0xc] sm:$0xe]  ;;  %v2961_v49 = vld [vmem:[%s3584_s19 + $0x78] sm:$0xe] }
  0x25   : > { %767 = vrot.lane.b32.xlu1 %v596_v14, %s3534_s22  ;;  %v675_v8 = vor.u32 %v674_v10, %v670_v30  ;;  %v1187_v22 = vrot.slane %v1185_v11, 1  ;;  %v1197_v26 = vshll.u32 %v3089_v12, 16  ;;  %v1190_v27 = vshll.u32 %v3661_v13, 16  ;;  %v3684_v11 = vld [vmem:[%s3584_s19 + $0x20] ss:$0 sps:$4 sm:$0x11]  }
  0x26   : > { %765 = vrot.lane.b32.xlu0 %v584_v9, %s3534_s22  ;;  %v692_v25 = vsel %vm572_vm1, %v687_v15, %v691_v6  ;;  %v1087_v28 = vshrl.u32 %v3598_v5, 16  ;;  %v1101_v30 = vshll.u32 %v3081_v19, 16  ;;  %v1091_v32 = vrot.slane %v1089_v17, 1  ;;  %v2953_v53 = vld [vmem:[%s3584_s19 + $0x18] sm:$0xe] }
  0x27   : > { %v680_v29 = vsel %vm572_vm1, %v675_v8, %v679_v16  ;;  %v1094_v2 = vshll.u32 %v3666_v20, 16  ;;  %v1188_v33 = vor.u32 %v1187_v22, %v1183_v21  ;;  %v1192_v34 = vrot.slane %v1190_v27, 1  ;;  %v2984_v54 = vld [vmem:[%s3584_s19 + $0x78] sm:$0xf]  ;;  %v3711_v60 = vld [vmem:[%s3584_s19 + $0x1c] sm:$0xf] }
  0x28   : > { %v1092_v35 = vor.u32 %v1091_v32, %v1087_v28  ;;  %v1195_v36 = vshrl.u32 %v3089_v12, 16  ;;  %v1199_v37 = vrot.slane %v1197_v26, 1  ;;  %v1202_v39 = vshll.u32 %v3673_v24, 16  ;;  %v2968_v55 = vld [vmem:[%s3584_s19 + $0x18] sm:$0xf] }
  0x29   : > { %783 = vrot.lane.b32.xlu1 %v692_v25, %s3534_s22  ;;  %v1096_v5 = vrot.slane %v1094_v2, 1  ;;  %v1099_v17 = vshrl.u32 %v3081_v19, 16  ;;  %v1103_v41 = vrot.slane %v1101_v30, 1  ;;  %v1106_v42 = vshll.u32 %v3684_v11, 16  ;;  %v2986_v7 = vld [vmem:[%s3584_s19 + $0x84] sm:$0xf] }
  0x2a   : > { %781 = vrot.lane.b32.xlu0 %v680_v29, %s3534_s22  ;;  %v3120_v44 = vcombine.low %v2960_v40, %v3588_v1  ;;  %v1193_v45 = vsel %vm572_vm1, %v1188_v33, %v1192_v34  ;;  %v1200_v46 = vor.u32 %v1199_v37, %v1195_v36  ;;  %v1204_v47 = vrot.slane %v1202_v39, 1  ;;  %v3703_v1 = vld [vmem:[%s3584_s19 + $0x7c] sm:$0xf]  ;;  %v3721_v9 = vld [vmem:[%s3584_s19 + $0x88] sm:$0xf] }
  0x2b   : > { %v3112_v48 = vcombine.low %v2952_v43, %v3595_v4  ;;  %v1097_v50 = vsel %vm572_vm1, %v1092_v35, %v1096_v5  ;;  %v1104_v51 = vor.u32 %v1103_v41, %v1099_v17  ;;  %v1108_v52 = vrot.slane %v1106_v42, 1  ;;  %v3728_v14 = vld [vmem:[%s3584_s19 + $0x28] sm:$0xf]  ;;  %v3734_v21 = vld [vmem:[%s3584_s19 + $0x80] ss:$0 sps:$4 sm:$0x11]  }
  0x2c   : > { %v3121_v56 = vcombine.low %v2961_v49, %v3648_v57  ;;  %v1205_v4 = vsel %vm572_vm1, %v1200_v46, %v1204_v47  ;;  %v1382_v58 = vrot.slane %v3120_v44, 1  ;;  %v1383_v59 = vrot.slane %v3661_v13, 1  ;;  %v2970_v13 = vld [vmem:[%s3584_s19 + $0x24] sm:$0xf]  ;;  %v264_v37 = vld [vmem:[%s3584_s19 + $0x78] sm:$0xf] }
  0x2d   : > { %1024 = vrot.lane.b32.xlu1 %v3089_v12, %s3532_s20  ;;  %v3113_v61 = vcombine.low %v2953_v53, %v3654_v63  ;;  %v1109_v62 = vsel %vm572_vm1, %v1104_v51, %v1108_v52  ;;  %v1358_v0 = vrot.slane %v3112_v48, 1  ;;  %v1359_v3 = vrot.slane %v3666_v20, 1  ;;  %v3741_v26 = vld [vmem:[%s3584_s19 + $0x20] ss:$0 sps:$4 sm:$0x11]  }
  0x2e   : > { %1008 = vrot.lane.b32.xlu0 %v3081_v19, %s3532_s20  ;;  %v3136_v57 = vcombine.low %v2984_v54, %v3703_v1  ;;  %v3128_v6 = vcombine.low %v2968_v55, %v3711_v60  ;;  %v1384_v10 = vsel %vm845_vm0, %v1382_v58, %v1383_v59  ;;  %v1385_v63 = vrot.slane %v3121_v56, 1  ;;  %v3747_v34 = vld [vmem:[%s3584_s19 + $0x8c] ss:$0 sps:$4 sm:$0x11]   ;;  %v3756_v39 = vld [vmem:[%s3584_s19 + $0x7c] sm:$0xf] }
  0x2f   : > { %v1386_v12 = vrot.slane %v3673_v24, 1  ;;  %v1360_v15 = vsel %vm845_vm0, %v1358_v0, %v1359_v3  ;;  %v1361_v16 = vrot.slane %v3113_v61, 1  ;;  %v1362_v19 = vrot.slane %v3684_v11, 1  ;;  %v3752_v36 = vld [vmem:[%s3584_s19 + $0x2c] ss:$0 sps:$4 sm:$0x11]  }
  0x30   : > { %v1697_v20 = vshll.u32 %v3136_v57, 16  ;;  %v3137_v8 = vcombine.low %v2986_v7, %v3721_v9  ;;  %v1601_v22 = vshll.u32 %v3128_v6, 16  ;;  %v3129_v24 = vcombine.low %v2970_v13, %v3728_v14  ;;  %v248_v40 = vld [vmem:[%s3584_s19 + $0x18] sm:$0xf]  ;;  %v3760_v17 = vld [vmem:[%s3584_s19 + $0x1c] sm:$0xf] }
  0x31   : > { %1294 = vrot.lane.b32.xlu1 %v1193_v45, %s3535_s23  ;;  %v1387_v25 = vsel %vm845_vm0, %v1385_v63, %v1386_v12  ;;  %v1363_v27 = vsel %vm845_vm0, %v1361_v16, %v1362_v19  ;;  %v1695_v29 = vshrl.u32 %v3136_v57, 16  ;;  %v1702_v32 = vshll.u32 %v3734_v21, 16  ;;  %v3457_v41 = vld [vmem:[%s4910_s1] sm:$0xff]   ;;  %v3024_v42 = vld [vmem:[%s3584_s19 + $0x78] sm:$0xe]  ;;  %v3462_v56 = vld [vmem:[%s4910_s1 + $0x8] sm:$0xff]  }
  0x32   : > { %1278 = vrot.lane.b32.xlu0 %v1097_v50, %s3535_s23  ;;  %v1709_v28 = vshll.u32 %v3137_v8, 16  ;;  %v1699_v30 = vrot.slane %v1697_v20, 1  ;;  %v1613_v2 = vshll.u32 %v3129_v24, 16  ;;  %v1599_v11 = vshrl.u32 %v3128_v6, 16  ;;  %v3016_v47 = vld [vmem:[%s3584_s19 + $0x18] sm:$0xe]  ;;  %3282 = vmatprep.subr.bf16.mxu0 %v3457_v41 }
  0x33   : > { %v1603_v33 = vrot.slane %v1601_v22, 1  ;;  %v1606_v35 = vshll.u32 %v3741_v26, 16  ;;  %v1704_v43 = vrot.slane %v1702_v32, 1  ;;  %v1707_v44 = vshrl.u32 %v3137_v8, 16  ;;  %3320 = vmatprep.subr.bf16.mxu1 %v3457_v41  ;;  %3283 = vmatpush3.bf16.msra.mxu0 %v3457_v41  ;;  %v266_v7 = vld [vmem:[%s3584_s19 + $0x84] sm:$0xf] }
  0x34   : > { %v1700_v5 = vor.u32 %v1699_v30, %v1695_v29  ;;  %v1711_v45 = vrot.slane %v1709_v28, 1  ;;  %v1714_v46 = vshll.u32 %v3747_v34, 16  ;;  %v1611_v48 = vshrl.u32 %v3129_v24, 16  ;;  %3323 = vmatpush3.bf16.msra.mxu1 %v3457_v41  ;;  %v3784_v61 = vld [vmem:[%s3584_s19 + $0x80] ss:$0 sps:$4 sm:$0x11]   ;;  %3284 = vmatprep.subr.bf16.mxu0 %v3462_v56 }
  0x35   : > { %1296 = vrot.lane.b32.xlu1 %v1205_v4, %s3535_s23  ;;  %v1615_v49 = vrot.slane %v1613_v2, 1  ;;  %v1618_v50 = vshll.u32 %v3752_v36, 16  ;;  %v3772_v51 = vcombine.low %v264_v37, %v3756_v39  ;;  %v1604_v52 = vor.u32 %v1603_v33, %v1599_v11  ;;  %3321 = vmatprep.subr.bf16.mxu1 %v3462_v56  ;;  %v250_v13 = vld [vmem:[%s3584_s19 + $0x24] sm:$0xf] }
  0x36   : > { %1280 = vrot.lane.b32.xlu0 %v1109_v62, %s3535_s23  ;;  %v1608_v53 = vrot.slane %v1606_v35, 1  ;;  %v3775_v54 = vcombine.low %v248_v40, %v3760_v17  ;;  %v3168_v55 = vcombine.low %v3024_v42, %v3703_v1  ;;  %v3160_v4 = vcombine.low %v3016_v47, %v3711_v60  ;;  %v3025_v16 = vld [vmem:[%s3584_s19 + $0x84] sm:$0xe]  ;;  %v3826_v40 = vld [vmem:[%s3584_s19 + $0x8c] ss:$0 sps:$4 sm:$0x11]  }
  0x37   : > { %v1712_v58 = vor.u32 %v1711_v45, %v1707_v44  ;;  %v1716_v59 = vrot.slane %v1714_v46, 1  ;;  %v1705_v1 = vsel %vm572_vm1, %v1700_v5, %v1704_v43  ;;  %v1616_v62 = vor.u32 %v1615_v49, %v1611_v48  ;;  %3285 = vmatpush3.bf16.msra.mxu0 %v3462_v56 }
  0x38   : > { %v1620_v0 = vrot.slane %v1618_v50, 1  ;;  %v696_v3 = vshll.u32 %v3772_v51, 16  ;;  %v1609_v60 = vsel %vm572_vm1, %v1604_v52, %v1608_v53  ;;  %v1894_v63 = vrot.slane %v3168_v55, 1  ;;  %3324 = vmatpush3.bf16.msra.mxu1 %v3462_v56  ;;  %v302_v53 = vld [vmem:[%s3584_s19 + $0x78] sm:$0xe] }
  0x39   : > { %1422 = vrot.lane.b32.xlu1 %v1384_v10, %s3536_s24  ;;  %v3796_v10 = vld [vmem:[%s3584_s19 + $0x88] sm:$0xf]  ;;  %v1895_v12 = vrot.slane %v3734_v21, 1  ;;  %v1717_v19 = vsel %vm572_vm1, %v1712_v58, %v1716_v59  ;;  %v1870_v20 = vrot.slane %v3160_v4, 1  ;;  %v701_v22 = vshll.u32 %v3784_v61, 16 }
  0x3a   : > { %1406 = vrot.lane.b32.xlu0 %v1360_v15, %s3536_s24  ;;  %v3801_v15 = vld [vmem:[%s3584_s19 + $0x28] sm:$0xf]  ;;  %v1621_v21 = vsel %vm572_vm1, %v1616_v62, %v1620_v0  ;;  %v3813_v28 = vcombine.low %v266_v7, %v3796_v10  ;;  %v598_v29 = vshrl.u32 %v3775_v54, 16  ;;  %v3169_v2 = vcombine.low %v3025_v16, %v3721_v9  ;;  %v3831_v9 = vld [vmem:[%s3584_s19 + $0x2c] ss:$0 sps:$4 sm:$0x11]  }
  0x3b   : > { %v3818_v32 = vcombine.low %v250_v13, %v3801_v15  ;;  %v703_v33 = vrot.slane %v701_v22, 1  ;;  %v1896_v35 = vsel %vm845_vm0, %v1894_v63, %v1895_v12  ;;  %v1898_v45 = vrot.slane %v3747_v34, 1  ;;  %v295_v63 = vld [vmem:[%s3584_s19 + $0x24] sm:$0xe] }
  0x3c   : > { %v708_v5 = vshll.u32 %v3813_v28, 16  ;;  %v1897_v44 = vrot.slane %v3169_v2, 1  ;;  %v1874_v47 = vrot.slane %v3752_v36, 1  ;;  %v706_v49 = vshrl.u32 %v3813_v28, 16  ;;  %v294_v36 = vld [vmem:[%s3584_s19 + $0x18] sm:$0xe] }
  0x3d   : > { %1424 = vrot.lane.b32.xlu1 %v1387_v25, %s3536_s24  ;;  %v694_v25 = vshrl.u32 %v3772_v51, 16  ;;  %v713_v52 = vshll.u32 %v3826_v40, 16  ;;  %v610_v56 = vshrl.u32 %v3818_v32, 16  ;;  %v617_v4 = vshll.u32 %v3831_v9, 16 }
  0x3e   : > { %1408 = vrot.lane.b32.xlu0 %v1363_v27, %s3536_s24  ;;  %v698_v27 = vrot.slane %v696_v3, 1  ;;  %v710_v50 = vrot.slane %v708_v5, 1  ;;  %v1899_v58 = vsel %vm845_vm0, %v1897_v44, %v1898_v45  ;;  %v3074_v62 = vcombine.low %v302_v53, %v3756_v39  ;;  %v303_v3 = vld [vmem:[%s3584_s19 + $0x84] sm:$0xe] }
  0x3f   : > { %v3066_v0 = vcombine.low %v294_v36, %v3760_v17  ;;  %v619_v7 = vrot.slane %v617_v4, 1  ;;  %v877_v12 = vrot.slane %v3784_v61, 1  ;;  %v3075_v16 = vcombine.low %v303_v3, %v3796_v10 }
  0x40   : > { %v699_v37 = vor.u32 %v698_v27, %v694_v25  ;;  %v711_v59 = vor.u32 %v710_v50, %v706_v49  ;;  %v876_v17 = vrot.slane %v3074_v62, 1  ;;  %v3067_v61 = vcombine.low %v295_v63, %v3801_v15  ;;  %v3878_v15 = vld [vmem:[%s3584_s19 + $0x94] sm:$0xf]  ;;  %v2954_v62 = vld [vmem:[%s3584_s19 + $0x24] sm:$0xe] }
  0x41   : > { %1534 = vrot.lane.b32.xlu1 %v3136_v57, %s3537_s27  ;;  %v3790_v57 = vld [vmem:[%s3584_s19 + $0x20] ss:$0 sps:$4 sm:$0x11]   ;;  %v879_v10 = vrot.slane %v3075_v16, 1 }
  0x42   : > { %1518 = vrot.lane.b32.xlu0 %v3128_v6, %s3537_s27  ;;  %v600_v6 = vshll.u32 %v3775_v54, 16  ;;  %v704_v48 = vsel %vm572_vm1, %v699_v37, %v703_v33  ;;  %v853_v13 = vrot.slane %v3790_v57, 1  ;;  %v878_v27 = vsel %vm845_vm0, %v876_v17, %v877_v12  ;;  %v2910_v33 = vld [vmem:[%s3584_s19 + $0x30] sm:$0xf] }
  0x43   : > { %v855_v2 = vrot.slane %v3067_v61, 1  ;;  %v2963_v12 = vld [vmem:[%s3584_s19 + $0x90] sm:$0xe] }
  0x44   : > { %v602_v30 = vrot.slane %v600_v6, 1  ;;  %v3123_v61 = vcombine.low %v2963_v12, %v3878_v15 }
  0x45   : > { %1536 = vrot.lane.b32.xlu1 %v3137_v8, %s3537_s27  ;;  %v1871_v8 = vrot.slane %v3741_v26, 1  ;;  %v605_v26 = vshll.u32 %v3790_v57, 16  ;;  %v2908_v57 = vld [vmem:[%s3584_s19 + $0x24] sm:$0xf] }
  0x46   : > { %1520 = vrot.lane.b32.xlu0 %v3129_v24, %s3537_s27  ;;  %v3017_v24 = vld [vmem:[%s3584_s19 + $0x24] sm:$0xe]  ;;  %v603_v42 = vor.u32 %v602_v30, %v598_v29  ;;  %v2926_v30 = vld [vmem:[%s3584_s19 + $0x90] sm:$0xf] }
  0x47   : > { %v3161_v11 = vcombine.low %v3017_v24, %v3728_v14  ;;  %v1872_v41 = vsel %vm845_vm0, %v1870_v20, %v1871_v8  ;;  %v607_v43 = vrot.slane %v605_v26, 1  ;;  %v612_v14 = vshll.u32 %v3818_v32, 16  ;;  %v2924_v20 = vld [vmem:[%s3584_s19 + $0x84] sm:$0xf]  ;;  %v3862_v8 = vld [vmem:[%s3584_s19 + $0x88] sm:$0xf] }
  0x48   : > { %v3868_v24 = vld [vmem:[%s3584_s19 + $0x28] sm:$0xf]  ;;  %v3090_v25 = vcombine.low %v2924_v20, %v3862_v8 }
  0x49   : > { %1806 = vrot.lane.b32.xlu1 %v1705_v1, %s3538_s30  ;;  %v1873_v46 = vrot.slane %v3161_v11, 1  ;;  %v608_v55 = vsel %vm572_vm1, %v603_v42, %v607_v43  ;;  %v614_v34 = vrot.slane %v612_v14, 1  ;;  %v715_v1 = vrot.slane %v713_v52, 1  ;;  %v3417_v43 = vld [vmem:[%s3584_s19 + $0x8c] ss:$0 sps:$4 sm:$0x11]  }
  0x4a   : > { %1790 = vrot.lane.b32.xlu0 %v1609_v60, %s3538_s30  ;;  %v3082_v29 = vcombine.low %v2908_v57, %v3868_v24  ;;  %v856_v11 = vrot.slane %v3831_v9, 1  ;;  %v1209_v37 = vshll.u32 %v3090_v25, 16  ;;  %v3894_v14 = vld [vmem:[%s3584_s19 + $0x2c] ss:$0 sps:$4 sm:$0x11]   ;;  %v1207_v45 = vshrl.u32 %v3090_v25, 16 }
  0x4b   : > { %v1875_v60 = vsel %vm845_vm0, %v1873_v46, %v1874_v47  ;;  %v615_v6 = vor.u32 %v614_v34, %v610_v56  ;;  %v716_v39 = vsel %vm572_vm1, %v711_v59, %v715_v1  ;;  %v1214_v49 = vshll.u32 %v3417_v43, 16  ;;  %v3899_v52 = vld [vmem:[%s3584_s19 + $0x98] ss:$0 sps:$4 sm:$0x11]   ;;  %v2962_v56 = vld [vmem:[%s3584_s19 + $0x84] sm:$0xe] }
  0x4c   : > { %v857_v9 = vsel %vm845_vm0, %v855_v2, %v856_v11  ;;  %v1211_v46 = vrot.slane %v1209_v37, 1  ;;  %v1111_v47 = vshrl.u32 %v3082_v29, 16  ;;  %v1118_v53 = vshll.u32 %v3894_v14, 16  ;;  %v2988_v57 = vld [vmem:[%s3584_s19 + $0x90] sm:$0xf] }
  0x4d   : > { %1808 = vrot.lane.b32.xlu1 %v1717_v19, %s3538_s30  ;;  %v852_v19 = vrot.slane %v3066_v0, 1  ;;  %v620_v22 = vsel %vm572_vm1, %v615_v6, %v619_v7  ;;  %v1216_v36 = vrot.slane %v1214_v49, 1  ;;  %v1226_v1 = vshll.u32 %v3899_v52, 16  ;;  %v2990_v11 = vld [vmem:[%s3584_s19 + $0x9c] sm:$0xf] }
  0x4e   : > { %1792 = vrot.lane.b32.xlu0 %v1621_v21, %s3538_s30  ;;  %v880_v21 = vrot.slane %v3826_v40, 1  ;;  %v3091_v40 = vcombine.low %v2926_v30, %v3878_v15  ;;  %v1212_v34 = vor.u32 %v1211_v46, %v1207_v45  ;;  %v1120_v0 = vrot.slane %v1118_v53, 1  ;;  %v3932_v15 = vld [vmem:[%s3584_s19 + $0x34] sm:$0xf]  ;;  %v3949_v45 = vld [vmem:[%s3584_s19 + $0x40] sm:$0xf] }
  0x4f   : > { %v854_v26 = vsel %vm845_vm0, %v852_v19, %v853_v13  ;;  %v3122_v7 = vcombine.low %v2962_v56, %v3862_v8  ;;  %v3114_v63 = vcombine.low %v2954_v62, %v3868_v24  ;;  %v3923_v24 = vld [vmem:[%s3584_s19 + $0x94] sm:$0xf]  ;;  %v3952_v46 = vld [vmem:[%s3584_s19 + $0x98] ss:$0 sps:$4 sm:$0x11]  }
  0x50   : > { %v881_v5 = vsel %vm845_vm0, %v879_v10, %v880_v21  ;;  %v1221_v44 = vshll.u32 %v3091_v40, 16  ;;  %v1219_v4 = vshrl.u32 %v3091_v40, 16  ;;  %v1217_v13 = vsel %vm572_vm1, %v1212_v34, %v1216_v36  ;;  %v3958_v49 = vld [vmem:[%s3584_s19 + $0x38] ss:$0 sps:$4 sm:$0x11]  }
  0x51   : > { %1934 = vrot.lane.b32.xlu1 %v1896_v35, %s3539_s4  ;;  %v3884_v35 = vld [vmem:[%s3584_s19 + $0x34] sm:$0xf]  ;;  %v1388_v8 = vrot.slane %v3122_v7, 1  ;;  %v1389_v21 = vrot.slane %v3417_v43, 1  ;;  %v3138_v2 = vcombine.low %v2988_v57, %v3923_v24  ;;  %v1630_v62 = vshll.u32 %v3958_v49, 16 }
  0x52   : > { %1918 = vrot.lane.b32.xlu0 %v1872_v41, %s3539_s4  ;;  %v1113_v41 = vshll.u32 %v3082_v29, 16  ;;  %v3083_v42 = vcombine.low %v2910_v33, %v3884_v35  ;;  %v1223_v59 = vrot.slane %v1221_v44, 1  ;;  %v3937_v33 = vld [vmem:[%s3584_s19 + $0xa0] sm:$0xf] }
  0x53   : > { %v1390_v37 = vsel %vm845_vm0, %v1388_v8, %v1389_v21  ;;  %v1721_v44 = vshll.u32 %v3138_v2, 16  ;;  %v1719_v56 = vshrl.u32 %v3138_v2, 16  ;;  %v1632_v8 = vrot.slane %v1630_v62, 1 }
  0x54   : > { %v1115_v50 = vrot.slane %v1113_v41, 1  ;;  %v1123_v3 = vshrl.u32 %v3083_v42, 16  ;;  %v1224_v16 = vor.u32 %v1223_v59, %v1219_v4  ;;  %v1726_v4 = vshll.u32 %v3952_v46, 16  ;;  %v3969_v59 = vld [vmem:[%s3584_s19 + $0x44] ss:$0 sps:$4 sm:$0x11]  }
  0x55   : > { %785 = vrot.lane.b32.xlu1 %v704_v48, %s3534_s22  ;;  %v1125_v48 = vshll.u32 %v3083_v42, 16  ;;  %v1723_v34 = vrot.slane %v1721_v44, 1  ;;  %v3027_v44 = vld [vmem:[%s3584_s19 + $0x9c] sm:$0xe] }
  0x56   : > { %769 = vrot.lane.b32.xlu0 %v608_v55, %s3534_s22  ;;  %v3903_v55 = vld [vmem:[%s3584_s19 + $0x38] ss:$0 sps:$4 sm:$0x11]  }
  0x57   : > { %v1130_v6 = vshll.u32 %v3903_v55, 16  ;;  %v1368_v43 = vrot.slane %v3903_v55, 1  ;;  %v3026_v55 = vld [vmem:[%s3584_s19 + $0x90] sm:$0xe] }
  0x58   : > { %v3170_v7 = vcombine.low %v3026_v55, %v3923_v24  ;;  %v1877_v55 = vrot.slane %v3958_v49, 1 }
  0x59   : > { %1936 = vrot.lane.b32.xlu1 %v1899_v58, %s3539_s4  ;;  %v1116_v58 = vor.u32 %v1115_v50, %v1111_v47  ;;  %v1132_v20 = vrot.slane %v1130_v6, 1  ;;  %v3467_v6 = vld [vmem:[%s4910_s1 + $0x10] ss:$0 sps:$4 sm:$0x33]  }
  0x5a   : > { %1920 = vrot.lane.b32.xlu0 %v1875_v60, %s3539_s4  ;;  %v1127_v60 = vrot.slane %v1125_v48, 1  ;;  %3326 = vmatprep.subr.msk.bf16.mxu0 %vm2274_vm2, %v3467_v6 }
  0x5b   : > { %v1121_v17 = vsel %vm572_vm1, %v1116_v58, %v1120_v0  ;;  %v3966_v58 = vld [vmem:[%s3584_s19 + $0xa4] ss:$0 sps:$4 sm:$0x11]   ;;  %v268_v0 = vld [vmem:[%s3584_s19 + $0x90] sm:$0xf]  ;;  %3327 = vmatprep.subr.msk.bf16.mxu1 %vm2274_vm2, %v3467_v6 }
  0x5c   : > { %v1128_v19 = vor.u32 %v1127_v60, %v1123_v3  ;;  %v3975_v60 = vld [vmem:[%s3584_s19 + $0x94] sm:$0xf] }
  0x5d   : > { %787 = vrot.lane.b32.xlu1 %v716_v39, %s3534_s22  ;;  %v1228_v39 = vrot.slane %v1226_v1, 1  ;;  %v3990_v57 = vcombine.low %v268_v0, %v3975_v60 }
  0x5e   : > { %771 = vrot.lane.b32.xlu0 %v620_v22, %s3534_s22  ;;  %v2955_v22 = vld [vmem:[%s3584_s19 + $0x30] sm:$0xe]  ;;  %v1133_v30 = vsel %vm572_vm1, %v1128_v19, %v1132_v20  ;;  %v1738_v19 = vshll.u32 %v3966_v58, 16 }
  0x5f   : > { %v1229_v10 = vsel %vm572_vm1, %v1224_v16, %v1228_v39  ;;  %v3983_v16 = vld [vmem:[%s3584_s19 + $0x34] sm:$0xf]  ;;  %v1728_v39 = vrot.slane %v1726_v4, 1  ;;  %v3018_v20 = vld [vmem:[%s3584_s19 + $0x30] sm:$0xe]  ;;  %4917 = vst [vmem:[#allocation2_spill] sm:$0xff] %v3990_v57 }
  0x61   : > { %914 = vrot.lane.b32.xlu1 %v878_v27, %s3533_s21  ;;  %v1365_v27 = vrot.slane %v3894_v14, 1  ;;  %v2974_v14 = vld [vmem:[%s3584_s19 + $0x3c] sm:$0xf] }
  0x62   : > { %898 = vrot.lane.b32.xlu0 %v854_v26, %s3533_s21  ;;  %v2972_v26 = vld [vmem:[%s3584_s19 + $0x30] sm:$0xf]  ;;  %v3131_v53 = vcombine.low %v2974_v14, %v3949_v45  ;;  %v4014_v14 = vld [vmem:[%s3584_s19 + $0xa0] sm:$0xf] }
  0x64   : > { %v1637_v3 = vshll.u32 %v3131_v53, 16 }
  0x65   : > { %916 = vrot.lane.b32.xlu1 %v881_v5, %s3533_s21  ;;  %v3130_v5 = vcombine.low %v2972_v26, %v3932_v15  ;;  %v3999_v26 = vld [vmem:[%s3584_s19 + $0x98] ss:$0 sps:$4 sm:$0x11]  }
  0x66   : > { %900 = vrot.lane.b32.xlu0 %v857_v9, %s3533_s21  ;;  %v3139_v9 = vcombine.low %v2990_v11, %v3937_v33  ;;  %v1639_v24 = vrot.slane %v1637_v3, 1  ;;  %v1900_v11 = vrot.slane %v3170_v7, 1  ;;  %v725_v4 = vshll.u32 %v3999_v26, 16 }
  0x67   : > { %v1625_v48 = vshll.u32 %v3130_v5, 16  ;;  %v1623_v36 = vshrl.u32 %v3130_v5, 16  ;;  %v3171_v7 = vcombine.low %v3027_v44, %v3937_v33 }
  0x68   : > { %v1731_v12 = vshrl.u32 %v3139_v9, 16 }
  0x69   : > { %1026 = vrot.lane.b32.xlu1 %v3090_v25, %s3532_s20  ;;  %v1364_v25 = vrot.slane %v3114_v63, 1  ;;  %v1627_v1 = vrot.slane %v1625_v48, 1  ;;  %v1724_v63 = vor.u32 %v1723_v34, %v1719_v56  ;;  %v4019_v48 = vld [vmem:[%s3584_s19 + $0x40] sm:$0xf]  ;;  %v718_v56 = vshrl.u32 %v3990_v57, 16 }
  0x6a   : > { %1010 = vrot.lane.b32.xlu0 %v3082_v29, %s3532_s20  ;;  %v3115_v29 = vcombine.low %v2955_v22, %v3884_v35  ;;  %v1391_v35 = vrot.slane %v3123_v61, 1  ;;  %v1635_v61 = vshrl.u32 %v3131_v53, 16 }
  0x6b   : > { %v1366_v41 = vsel %vm845_vm0, %v1364_v25, %v1365_v27  ;;  %v1628_v22 = vor.u32 %v1627_v1, %v1623_v36  ;;  %v2276_v25 = vsel %vm2274_vm2, %v3467_v6, 0  ;;  %v3162_v27 = vcombine.low %v3018_v20, %v3932_v15 }
  0x6c   : > { %3287 = vmatpush3.bf16.msra.mxu0 %v2276_v25  ;;  %3325 = vmatpush3.bf16.msra.mxu1 %v2276_v25  ;;  %v720_v15 = vshll.u32 %v3990_v57, 16  ;;  %v1904_v25 = vrot.slane %v3966_v58, 1 }
  0x6d   : > { %1028 = vrot.lane.b32.xlu1 %v3091_v40, %s3532_s20  ;;  %v1392_v40 = vrot.slane %v3899_v52, 1  ;;  %v1733_v52 = vshll.u32 %v3139_v9, 16 }
  0x6e   : > { %1012 = vrot.lane.b32.xlu0 %v3083_v42, %s3532_s20  ;;  %v1367_v42 = vrot.slane %v3115_v29, 1  ;;  %v722_v34 = vrot.slane %v720_v15, 1  ;;  %v304_v15 = vld [vmem:[%s3584_s19 + $0x90] sm:$0xe] }
  0x6f   : > { %v1393_v47 = vsel %vm845_vm0, %v1391_v35, %v1392_v40  ;;  %v4006_v35 = vld [vmem:[%s3584_s19 + $0x38] ss:$0 sps:$4 sm:$0x11]   ;;  %v1633_v40 = vsel %vm572_vm1, %v1628_v22, %v1632_v8 }
  0x70   : > { %v1369_v50 = vsel %vm845_vm0, %v1367_v42, %v1368_v43  ;;  %v629_v36 = vshll.u32 %v4006_v35, 16 }
  0x71   : > { %1298 = vrot.lane.b32.xlu1 %v1217_v13, %s3535_s23  ;;  %v252_v13 = vld [vmem:[%s3584_s19 + $0x30] sm:$0xf] }
  0x72   : > { %1282 = vrot.lane.b32.xlu0 %v1121_v17, %s3535_s23  ;;  %v1735_v17 = vrot.slane %v1733_v52, 1  ;;  %v3994_v21 = vcombine.low %v252_v13, %v3983_v16  ;;  %v723_v13 = vor.u32 %v722_v34, %v718_v56 }
  0x74   : > { %4918 = vst [vmem:[#allocation3_spill] sm:$0xff] %v3994_v21  ;;  %v1736_v29 = vor.u32 %v1735_v17, %v1731_v12  ;;  %v624_v43 = vshll.u32 %v3994_v21, 16  ;;  %v622_v0 = vshrl.u32 %v3994_v21, 16  ;;  %v631_v17 = vrot.slane %v629_v36, 1 }
  0x75   : > { %1300 = vrot.lane.b32.xlu1 %v1229_v10, %s3535_s23  ;;  %v1642_v10 = vshll.u32 %v3969_v59, 16 }
  0x76   : > { %1284 = vrot.lane.b32.xlu0 %v1133_v30, %s3535_s23  ;;  %v1740_v30 = vrot.slane %v1738_v19, 1  ;;  %v626_v3 = vrot.slane %v624_v43, 1  ;;  %v4047_v19 = vld [vmem:[%s3584_s19 + $0xa4] ss:$0 sps:$4 sm:$0x11]  }
  0x77   : > { %v1644_v42 = vrot.slane %v1642_v10, 1  ;;  %v1903_v10 = vrot.slane %v3171_v7, 1  ;;  %v296_v43 = vld [vmem:[%s3584_s19 + $0x30] sm:$0xe] }
  0x78   : > { %v1741_v52 = vsel %vm572_vm1, %v1736_v29, %v1740_v30  ;;  %v627_v8 = vor.u32 %v626_v3, %v622_v0  ;;  %v1880_v29 = vrot.slane %v3969_v59, 1  ;;  %v3068_v34 = vcombine.low %v296_v43, %v3983_v16  ;;  %v2928_v3 = vld [vmem:[%s3584_s19 + $0x9c] sm:$0xf] }
  0x79   : > { %1426 = vrot.lane.b32.xlu1 %v1390_v37, %s3536_s24  ;;  %v1901_v37 = vrot.slane %v3952_v46, 1  ;;  %v3019_v46 = vld [vmem:[%s3584_s19 + $0x3c] sm:$0xe]  ;;  %v1905_v44 = vsel %vm845_vm0, %v1903_v10, %v1904_v25  ;;  %v883_v0 = vrot.slane %v3999_v26, 1  ;;  %v2930_v25 = vld [vmem:[%s3584_s19 + $0xa8] sm:$0xf] }
  0x7a   : > { %1410 = vrot.lane.b32.xlu0 %v1366_v41, %s3536_s24  ;;  %v1640_v41 = vor.u32 %v1639_v24, %v1635_v61 }
  0x7b   : > { %v1902_v12 = vsel %vm845_vm0, %v1900_v11, %v1901_v37  ;;  %v737_v37 = vshll.u32 %v4047_v19, 16 }
  0x7c   : > { %v1645_v62 = vsel %vm572_vm1, %v1640_v41, %v1644_v42 }
  0x7d   : > { %1428 = vrot.lane.b32.xlu1 %v1393_v47, %s3536_s24  ;;  %v254_v47 = vld [vmem:[%s3584_s19 + $0x3c] sm:$0xf] }
  0x7e   : > { %1412 = vrot.lane.b32.xlu0 %v1369_v50, %s3536_s24  ;;  %v4037_v49 = vcombine.low %v254_v47, %v4019_v48 }
  0x80   : > { %4920 = vst [vmem:[#allocation5_spill] sm:$0xff] %v4037_v49  ;;  %v636_v61 = vshll.u32 %v4037_v49, 16  ;;  %v634_v41 = vshrl.u32 %v4037_v49, 16 }
  0x81   : > { %1538 = vrot.lane.b32.xlu1 %v3138_v2, %s3537_s27  ;;  %v1729_v2 = vsel %vm572_vm1, %v1724_v63, %v1728_v39  ;;  %v3163_v63 = vcombine.low %v3019_v46, %v3949_v45  ;;  %v727_v39 = vrot.slane %v725_v4, 1  ;;  %v4054_v45 = vld [vmem:[%s3584_s19 + $0x44] ss:$0 sps:$4 sm:$0x11]   ;;  %v739_v46 = vrot.slane %v737_v37, 1 }
  0x82   : > { %1522 = vrot.lane.b32.xlu0 %v3130_v5, %s3537_s27  ;;  %v638_v42 = vrot.slane %v636_v61, 1  ;;  %v641_v58 = vshll.u32 %v4054_v45, 16  ;;  %v305_v4 = vld [vmem:[%s3584_s19 + $0x9c] sm:$0xe] }
  0x83   : > { %v728_v30 = vsel %vm572_vm1, %v723_v13, %v727_v39  ;;  %v858_v39 = vrot.slane %v3068_v34, 1 }
  0x84   : > { %v643_v56 = vrot.slane %v641_v58, 1 }
  0x85   : > { %1540 = vrot.lane.b32.xlu1 %v3139_v9, %s3537_s27  ;;  %v270_v9 = vld [vmem:[%s3584_s19 + $0x9c] sm:$0xf] }
  0x86   : > { %1524 = vrot.lane.b32.xlu0 %v3131_v53, %s3537_s27  ;;  %v1876_v53 = vrot.slane %v3162_v27, 1  ;;  %v4032_v1 = vcombine.low %v270_v9, %v4014_v14  ;;  %v1879_v27 = vrot.slane %v3163_v63, 1  ;;  %v3076_v9 = vcombine.low %v304_v15, %v3975_v60  ;;  %v297_v60 = vld [vmem:[%s3584_s19 + $0x3c] sm:$0xe]  ;;  %v2914_v15 = vld [vmem:[%s3584_s19 + $0x48] sm:$0xf] }
  0x87   : > { %v3077_v63 = vcombine.low %v305_v4, %v4014_v14  ;;  %v3069_v26 = vcombine.low %v297_v60, %v4019_v48 }
  0x88   : > { %4919 = vst [vmem:[#allocation4_spill] sm:$0xff] %v4032_v1  ;;  %v732_v20 = vshll.u32 %v4032_v1, 16  ;;  %v1878_v33 = vsel %vm845_vm0, %v1876_v53, %v1877_v55  ;;  %v1881_v53 = vsel %vm845_vm0, %v1879_v27, %v1880_v29  ;;  %v639_v55 = vor.u32 %v638_v42, %v634_v41  ;;  %v4113_v27 = vld [vmem:[%s3584_s19 + $0xac] sm:$0xf] }
  0x89   : > { %v4009_v5 = vpop.permute.xlu1 %1022  ;;  %1810 = vrot.lane.b32.xlu1 %v1729_v2, %s3538_s30  ;;  %v730_v2 = vshrl.u32 %v4032_v1, 16  ;;  %v885_v10 = vrot.slane %v3077_v63, 1  ;;  %v3093_v41 = vcombine.low %v2930_v25, %v4113_v27  ;;  %v4128_v42 = vld [vmem:[%s3584_s19 + $0xa4] ss:$0 sps:$4 sm:$0x11]  }
  0x8a   : > { %v4023_v50 = vpop.permute.xlu0 %1006  ;;  %1794 = vrot.lane.b32.xlu0 %v1633_v40, %s3538_s30  ;;  %v734_v11 = vrot.slane %v732_v20, 1  ;;  %v632_v40 = vsel %vm572_vm1, %v627_v8, %v631_v17  ;;  %v644_v13 = vsel %vm572_vm1, %v639_v55, %v643_v56  ;;  %v859_v17 = vrot.slane %v4006_v35, 1  ;;  %v2912_v20 = vld [vmem:[%s3584_s19 + $0x3c] sm:$0xf] }
  0x8b   : > { %v886_v35 = vrot.slane %v4047_v19, 1  ;;  %v1245_v55 = vshll.u32 %v3093_v41, 16  ;;  %v1238_v34 = vshll.u32 %v4128_v42, 16  ;;  %v4151_v63 = vld [vmem:[%s3584_s19 + $0x50] ss:$0 sps:$4 sm:$0x11]  }
  0x8c   : > { %v735_v47 = vor.u32 %v734_v11, %v730_v2  ;;  %v861_v2 = vrot.slane %v3069_v26, 1  ;;  %v862_v11 = vrot.slane %v4054_v45, 1  ;;  %v2964_v26 = vld [vmem:[%s3584_s19 + $0x9c] sm:$0xe] }
  0x8d   : > { %v4039_v6 = vpop.permute.xlu1 %910  ;;  %1812 = vrot.lane.b32.xlu1 %v1741_v52, %s3538_s30  ;;  %v887_v58 = vsel %vm845_vm0, %v885_v10, %v886_v35  ;;  %v1247_v10 = vrot.slane %v1245_v55, 1  ;;  %v2956_v25 = vld [vmem:[%s3584_s19 + $0x3c] sm:$0xe] }
  0x8e   : > { %1796 = vrot.lane.b32.xlu0 %v1645_v62, %s3538_s30  ;;  %v882_v62 = vrot.slane %v3076_v9, 1  ;;  %v740_v7 = vsel %vm572_vm1, %v735_v47, %v739_v46  ;;  %v4133_v9 = vld [vmem:[%s3584_s19 + $0x44] ss:$0 sps:$4 sm:$0x11]  }
  0x8f   : > { %v4050_v22 = vpop.permute.xlu0 %894 }
  0x90   : > { %v884_v61 = vsel %vm845_vm0, %v882_v62, %v883_v0  ;;  %v4145_v62 = vld [vmem:[%s3584_s19 + $0xb0] ss:$0 sps:$4 sm:$0x11]  }
  0x91   : > { %1938 = vrot.lane.b32.xlu1 %v1902_v12, %s3539_s4  ;;  %v4092_v12 = vld [vmem:[%s3584_s19 + $0xa0] sm:$0xf]  ;;  %v1250_v35 = vshll.u32 %v4145_v62, 16 }
  0x92   : > { %v4058_v24 = vpop.permute.xlu1 %912  ;;  %1922 = vrot.lane.b32.xlu0 %v1878_v33, %s3539_s4  ;;  %v4101_v33 = vld [vmem:[%s3584_s19 + $0x40] sm:$0xf]  ;;  %v3092_v14 = vcombine.low %v2928_v3, %v4092_v12 }
  0x93   : > { %v3084_v48 = vcombine.low %v2912_v20, %v4101_v33  ;;  %v1240_v20 = vrot.slane %v1238_v34, 1  ;;  %v1252_v34 = vrot.slane %v1250_v35, 1 }
  0x94   : > { %v4070_v59 = vpop.permute.xlu0 %896  ;;  %v1233_v19 = vshll.u32 %v3092_v14, 16 }
  0x95   : > { %789 = vrot.lane.b32.xlu1 %v728_v30, %s3534_s22  ;;  %v860_v30 = vsel %vm845_vm0, %v858_v39, %v859_v17  ;;  %v1137_v43 = vshll.u32 %v3084_v48, 16  ;;  %v1135_v4 = vshrl.u32 %v3084_v48, 16  ;;  %v1243_v17 = vshrl.u32 %v3093_v41, 16 }
  0x96   : > { %773 = vrot.lane.b32.xlu0 %v632_v40, %s3534_s22  ;;  %v4123_v40 = vld [vmem:[%s3584_s19 + $0x4c] sm:$0xf]  ;;  %v1235_v56 = vrot.slane %v1233_v19, 1 }
  0x97   : > { %v4077_v52 = vpop.permute.xlu1 %767  ;;  %v3085_v47 = vcombine.low %v2914_v15, %v4123_v40  ;;  %v1139_v60 = vrot.slane %v1137_v43, 1  ;;  %v1154_v15 = vshll.u32 %v4151_v63, 16  ;;  %v4167_v43 = vld [vmem:[%s3584_s19 + $0xac] sm:$0xf] }
  0x98   : > { %v4082_v36 = vpop.permute.xlu0 %765 }
  0x99   : > { %1940 = vrot.lane.b32.xlu1 %v1905_v44, %s3539_s4  ;;  %v863_v44 = vsel %vm845_vm0, %v861_v2, %v862_v11  ;;  %v1149_v3 = vshll.u32 %v3085_v47, 16  ;;  %v1147_v11 = vshrl.u32 %v3085_v47, 16 }
  0x9a   : > { %1924 = vrot.lane.b32.xlu0 %v1881_v53, %s3539_s4  ;;  %v1231_v53 = vshrl.u32 %v3092_v14, 16 }
  0x9b   : > { %v4094_v16 = vpop.permute.xlu1 %783 }
  0x9c   : > { %v4103_v8 = vpop.permute.xlu0 %781  ;;  %v1236_v39 = vor.u32 %v1235_v56, %v1231_v53  ;;  %v2965_v53 = vld [vmem:[%s3584_s19 + $0xa8] sm:$0xe]  ;;  %v1248_v56 = vor.u32 %v1247_v10, %v1243_v17  ;;  %v4193_v10 = vld [vmem:[%s3584_s19 + $0xb8] sm:$0xf] }
  0x9d   : > { %791 = vrot.lane.b32.xlu1 %v740_v7, %s3534_s22  ;;  %v1142_v7 = vshll.u32 %v4133_v9, 16  ;;  %v3125_v17 = vcombine.low %v2965_v53, %v4113_v27  ;;  %v4201_v27 = vld [vmem:[%s3584_s19 + $0x58] sm:$0xf] }
  0x9e   : > { %775 = vrot.lane.b32.xlu0 %v644_v13, %s3534_s22  ;;  %v1241_v55 = vsel %vm572_vm1, %v1236_v39, %v1240_v20  ;;  %v4186_v39 = vld [vmem:[%s3584_s19 + $0x4c] sm:$0xf]  ;;  %v1395_v20 = vrot.slane %v4128_v42, 1 }
  0x9f   : > { %v4115_v29 = vpop.permute.xlu1 %1024  ;;  %v1144_v2 = vrot.slane %v1142_v7, 1  ;;  %v1156_v7 = vrot.slane %v1154_v15, 1 }
  0xa0   : > { %v4119_v37 = vpop.permute.xlu0 %1008 }
  0xa1   : > { %918 = vrot.lane.b32.xlu1 %v884_v61, %s3533_s21  ;;  %v1140_v61 = vor.u32 %v1139_v60, %v1135_v4  ;;  %v2957_v4 = vld [vmem:[%s3584_s19 + $0x48] sm:$0xe] }
  0xa2   : > { %902 = vrot.lane.b32.xlu0 %v860_v30, %s3533_s21  ;;  %v3117_v35 = vcombine.low %v2957_v4, %v4123_v40  ;;  %v4211_v40 = vld [vmem:[%s3584_s19 + $0xb0] ss:$0 sps:$4 sm:$0x11]   ;;  %v1398_v4 = vrot.slane %v4145_v62, 1 }
  0xa3   : > { %v4135_v45 = vpop.permute.xlu1 %1294 }
  0xa4   : > { %v4139_v46 = vpop.permute.xlu0 %1278 }
  0xa5   : > { %920 = vrot.lane.b32.xlu1 %v887_v58, %s3533_s21  ;;  %v2992_v58 = vld [vmem:[%s3584_s19 + $0xa8] sm:$0xf] }
  0xa6   : > { %904 = vrot.lane.b32.xlu0 %v863_v44, %s3533_s21  ;;  %v3116_v44 = vcombine.low %v2956_v25, %v4101_v33  ;;  %v1253_v25 = vsel %vm572_vm1, %v1248_v56, %v1252_v34 }
  0xa7   : > { %v4147_v0 = vpop.permute.xlu1 %1296 }
  0xa8   : > { %v4153_v13 = vpop.permute.xlu0 %1280 }
  0xa9   : > { %1030 = vrot.lane.b32.xlu1 %v3092_v14, %s3532_s20  ;;  %v1151_v14 = vrot.slane %v1149_v3, 1  ;;  %v1145_v3 = vsel %vm572_vm1, %v1140_v61, %v1144_v2  ;;  %v2994_v61 = vld [vmem:[%s3584_s19 + $0xb4] sm:$0xf]  ;;  %v1370_v2 = vrot.slane %v3116_v44, 1 }
  0xaa   : > { %1014 = vrot.lane.b32.xlu0 %v3084_v48, %s3532_s20  ;;  %v3124_v48 = vcombine.low %v2964_v26, %v4092_v12  ;;  %v4216_v44 = vcombine.low %v2994_v61, %v4193_v10 }
  0xab   : > { %v4160_v30 = vpop.permute.xlu1 %1422  ;;  %v1152_v12 = vor.u32 %v1151_v14, %v1147_v11  ;;  %v1371_v11 = vrot.slane %v4133_v9, 1  ;;  %v2978_v14 = vld [vmem:[%s3584_s19 + $0x54] sm:$0xf] }
  0xac   : > { %v4163_v19 = vpop.permute.xlu0 %1406  ;;  %v1394_v26 = vrot.slane %v3124_v48, 1  ;;  %v4221_v56 = vcombine.low %v2978_v14, %v4201_v27  ;;  %v1757_v62 = vshll.u32 %v4216_v44, 16 }
  0xad   : > { %1032 = vrot.lane.b32.xlu1 %v3093_v41, %s3532_s20  ;;  %v4180_v41 = vcombine.low %v2992_v58, %v4167_v43  ;;  %v1157_v58 = vsel %vm572_vm1, %v1152_v12, %v1156_v7  ;;  %v1372_v34 = vsel %vm845_vm0, %v1370_v2, %v1371_v11  ;;  %v1374_v12 = vrot.slane %v4151_v63, 1  ;;  %v4236_v63 = vld [vmem:[%s3584_s19 + $0x50] ss:$0 sps:$4 sm:$0x11]  }
  0xae   : > { %1016 = vrot.lane.b32.xlu0 %v3085_v47, %s3532_s20  ;;  %v2976_v47 = vld [vmem:[%s3584_s19 + $0x48] sm:$0xf]  ;;  %v1396_v9 = vsel %vm845_vm0, %v1394_v26, %v1395_v20  ;;  %v1750_v20 = vshll.u32 %v4211_v40, 16  ;;  %v4244_v2 = vld [vmem:[%s3584_s19 + $0xbc] ss:$0 sps:$4 sm:$0x11]   ;;  %v1952_v11 = vsel %vm1950_vm3, %v3621_v23, %v4082_v36 }
  0xaf   : > { %v4176_v60 = vpop.permute.xlu1 %1424  ;;  %v1745_v42 = vshll.u32 %v4180_v41, 16  ;;  %v4208_v48 = vcombine.low %v2976_v47, %v4186_v39 }
  0xb0   : > { %v4182_v33 = vpop.permute.xlu0 %1408  ;;  %v1752_v1 = vrot.slane %v1750_v20, 1 }
  0xb1   : > { %1302 = vrot.lane.b32.xlu1 %v1241_v55, %s3535_s23  ;;  %v1397_v55 = vrot.slane %v3125_v17, 1  ;;  %v1649_v47 = vshll.u32 %v4208_v48, 16  ;;  %v1743_v17 = vshrl.u32 %v4180_v41, 16  ;;  %v1747_v26 = vrot.slane %v1745_v42, 1 }
  0xb2   : > { %1286 = vrot.lane.b32.xlu0 %v1145_v3, %s3535_s23  ;;  %v1373_v3 = vrot.slane %v3117_v35, 1  ;;  %v1968_v35 = vsel %vm1950_vm3, %v3616_v18, %v4103_v8  ;;  %v3028_v18 = vld [vmem:[%s3584_s19 + $0xa8] sm:$0xe]  ;;  %v4254_v8 = vld [vmem:[%s3584_s19 + $0x5c] ss:$0 sps:$4 sm:$0x11]  }
  0xb3   : > { %v4203_v15 = vpop.permute.xlu1 %1534  ;;  %v1399_v14 = vsel %vm845_vm0, %v1397_v55, %v1398_v4  ;;  %v1748_v49 = vor.u32 %v1747_v26, %v1743_v17  ;;  %v1647_v21 = vshrl.u32 %v4208_v48, 16  ;;  %v1651_v57 = vrot.slane %v1649_v47, 1 }
  0xb4   : > { %v4213_v53 = vpop.permute.xlu0 %1518  ;;  %v2001_v23 = vsel %vm1983_vm4, %v1968_v35, %v4039_v6  ;;  %v1755_v55 = vshrl.u32 %v4216_v44, 16  ;;  %v1759_v4 = vrot.slane %v1757_v62, 1  ;;  %v1659_v47 = vshrl.u32 %v4221_v56, 16 }
  0xb5   : > { %1304 = vrot.lane.b32.xlu1 %v1253_v25, %s3535_s23  ;;  %v1661_v25 = vshll.u32 %v4221_v56, 16  ;;  %v3172_v6 = vcombine.low %v3028_v18, %v4167_v43  ;;  %v1666_v20 = vshll.u32 %v4254_v8, 16  ;;  %v1753_v35 = vsel %vm572_vm1, %v1748_v49, %v1752_v1 }
  0xb6   : > { %1288 = vrot.lane.b32.xlu0 %v1157_v58, %s3535_s23  ;;  %v1375_v58 = vsel %vm845_vm0, %v1373_v3, %v1374_v12  ;;  %v1985_v3 = vsel %vm1983_vm4, %v1952_v11, %v4050_v22  ;;  %v1762_v12 = vshll.u32 %v4244_v2, 16  ;;  %v2034_v22 = vsel %vm2016_vm5, %v2001_v23, %v4009_v5  ;;  %v272_v11 = vld [vmem:[%s3584_s19 + $0xa8] sm:$0xf]  ;;  %v4288_v23 = vld [vmem:[%s3584_s19 + $0x4c] sm:$0xf] }
  0xb7   : > { %v4227_v7 = vpop.permute.xlu1 %1536  ;;  %v1663_v17 = vrot.slane %v1661_v25, 1  ;;  %v1652_v25 = vor.u32 %v1651_v57, %v1647_v21  ;;  %v2067_v43 = vsel %vm2049_vm6, %v2034_v22, %v4135_v45  ;;  %v256_v5 = vld [vmem:[%s3584_s19 + $0x48] sm:$0xf]  ;;  %v274_v22 = vld [vmem:[%s3584_s19 + $0xb4] sm:$0xf] }
  0xb8   : > { %v4232_v61 = vpop.permute.xlu0 %1520  ;;  %v2100_v57 = vsel %vm2082_vm7, %v2067_v43, %v4160_v30  ;;  %v1764_v21 = vrot.slane %v1762_v12, 1  ;;  %v1970_v30 = vsel %vm1950_vm3, %v3628_v31, %v4094_v16  ;;  %v1906_v31 = vrot.slane %v3172_v6, 1  ;;  %v4320_v16 = vld [vmem:[%s3584_s19 + $0xb0] ss:$0 sps:$4 sm:$0x11]  }
  0xb9   : > { %1430 = vrot.lane.b32.xlu1 %v1396_v9, %s3536_s24  ;;  %v3020_v9 = vld [vmem:[%s3584_s19 + $0x48] sm:$0xe]  ;;  %v1664_v49 = vor.u32 %v1663_v17, %v1659_v47  ;;  %v2133_v45 = vsel %vm2115_vm8, %v2100_v57, %v4203_v15  ;;  %v4312_v15 = vcombine.low %v256_v5, %v4288_v23  ;;  %v2003_v47 = vsel %vm1983_vm4, %v1970_v30, %v4058_v24 }
  0xba   : > { %1414 = vrot.lane.b32.xlu0 %v1372_v34, %s3536_s24  ;;  %v1654_v34 = vshll.u32 %v4236_v63, 16  ;;  %v3164_v26 = vcombine.low %v3020_v9, %v4186_v39  ;;  %v2018_v39 = vsel %vm2016_vm5, %v1985_v3, %v4023_v50  ;;  %v1760_v9 = vor.u32 %v1759_v4, %v1755_v55 }
  0xbb   : > { %v1807_v42 = vpop.permute.xlu1 %1806  ;;  %v2051_v1 = vsel %vm2049_vm6, %v2018_v39, %v4139_v46  ;;  %v1883_v17 = vrot.slane %v4236_v63, 1  ;;  %v749_v43 = vshll.u32 %v4320_v16, 16  ;;  %v258_v39 = vld [vmem:[%s3584_s19 + $0x54] sm:$0xf] }
  0xbc   : > { %v1791_v36 = vpop.permute.xlu0 %1790  ;;  %v1656_v18 = vrot.slane %v1654_v34, 1  ;;  %v2084_v50 = vsel %vm2082_vm7, %v2051_v1, %v4163_v19  ;;  %v1668_v34 = vrot.slane %v1666_v20, 1  ;;  %v2166_v19 = vsel %vm2148_vm9, %v2133_v45, %v1807_v42 }
  0xbd   : > { %1432 = vrot.lane.b32.xlu1 %v1399_v14, %s3536_s24  ;;  %v4278_v14 = vld [vmem:[%s3584_s19 + $0xac] sm:$0xf]  ;;  %v648_v20 = vshll.u32 %v4312_v15, 16 }
  0xbe   : > { %1416 = vrot.lane.b32.xlu0 %v1375_v58, %s3536_s24  ;;  %v4303_v46 = vcombine.low %v272_v11, %v4278_v14  ;;  %v1657_v42 = vsel %vm572_vm1, %v1652_v25, %v1656_v18  ;;  %v4349_v25 = vld [vmem:[%s3584_s19 + $0xb8] sm:$0xf] }
  0xbf   : > { %v4273_v62 = vpop.permute.xlu1 %1808  ;;  %v4361_v18 = vld [vmem:[%s3584_s19 + $0x58] sm:$0xf] }
  0xc0   : > { %v4284_v58 = vpop.permute.xlu0 %1792  ;;  %v744_v6 = vshll.u32 %v4303_v46, 16 }
  0xc1   : > { %1542 = vrot.lane.b32.xlu1 %v4180_v41, %s3537_s27  ;;  %v2117_v41 = vsel %vm2115_vm8, %v2084_v50, %v4213_v53  ;;  %v4378_v50 = vcombine.low %v274_v22, %v4349_v25 }
  0xc2   : > { %1526 = vrot.lane.b32.xlu0 %v4208_v48, %s3537_s27  ;;  %v1954_v48 = vsel %vm1950_vm3, %v3634_v38, %v4077_v52  ;;  %v2150_v4 = vsel %vm2148_vm9, %v2117_v41, %v1791_v36  ;;  %v1907_v38 = vrot.slane %v4211_v40, 1  ;;  %v1882_v52 = vrot.slane %v3164_v26, 1  ;;  %v4329_v36 = vld [vmem:[%s3584_s19 + $0x50] ss:$0 sps:$4 sm:$0x11]  }
  0xc3   : > { %v1935_v55 = vpop.permute.xlu1 %1934  ;;  %v2036_v40 = vsel %vm2016_vm5, %v2003_v47, %v4115_v29  ;;  %v1987_v26 = vsel %vm1983_vm4, %v1954_v48, %v4070_v59  ;;  %v742_v59 = vshrl.u32 %v4303_v46, 16  ;;  %v751_v48 = vrot.slane %v749_v43, 1  ;;  %v298_v43 = vld [vmem:[%s3584_s19 + $0x48] sm:$0xe] }
  0xc4   : > { %v1919_v3 = vpop.permute.xlu0 %1918  ;;  %v2199_v12 = vsel %vm2181_vm10, %v2166_v19, %v1935_v55  ;;  %v2020_v63 = vsel %vm2016_vm5, %v1987_v26, %v4119_v37  ;;  %v2069_v29 = vsel %vm2049_vm6, %v2036_v40, %v4147_v0  ;;  %v646_v37 = vshrl.u32 %v4312_v15, 16 }
  0xc5   : > { %1544 = vrot.lane.b32.xlu1 %v4216_v44, %s3537_s27  ;;  %v2183_v53 = vsel %vm2181_vm10, %v2150_v4, %v1919_v3  ;;  %3304 = vmatprep.mubr.msk.bf16.mxu1 %vm2241_vm11, %v2199_v12  ;;  %v1765_v44 = vsel %vm572_vm1, %v1760_v9, %v1764_v21  ;;  %v2053_v9 = vsel %vm2049_vm6, %v2020_v63, %v4153_v13  ;;  %v653_v0 = vshll.u32 %v4329_v36, 16  ;;  %v3029_v21 = vld [vmem:[%s3584_s19 + $0xb4] sm:$0xe]  ;;  %v4399_v4 = vld [vmem:[%s3584_s19 + $0xbc] ss:$0 sps:$4 sm:$0x11]  }
  0xc6   : > { %1528 = vrot.lane.b32.xlu0 %v4221_v56, %s3537_s27  ;;  %3288 = vmatprep.mubr.msk.bf16.mxu0 %vm2241_vm11, %v2183_v53  ;;  %v1669_v56 = vsel %vm572_vm1, %v1664_v49, %v1668_v34  ;;  %v2102_v5 = vsel %vm2082_vm7, %v2069_v29, %v4176_v60  ;;  %v2086_v1 = vsel %vm2082_vm7, %v2053_v9, %v4182_v33  ;;  %v3021_v49 = vld [vmem:[%s3584_s19 + $0x54] sm:$0xe]  ;;  %v746_v13 = vrot.slane %v744_v6, 1 }
  0xc7   : > { %v4343_v24 = vpop.permute.xlu1 %785  ;;  %v2135_v57 = vsel %vm2115_vm8, %v2102_v5, %v4227_v7  ;;  %v2119_v60 = vsel %vm2115_vm8, %v2086_v1, %v4232_v61  ;;  %v650_v33 = vrot.slane %v648_v20, 1  ;;  %v4385_v34 = vcombine.low %v258_v39, %v4361_v18 }
  0xc8   : > { %v4355_v11 = vpop.permute.xlu0 %769  ;;  %v2152_v7 = vsel %vm2148_vm9, %v2119_v60, %v4284_v58  ;;  %v3173_v19 = vcombine.low %v3029_v21, %v4193_v10  ;;  %v3165_v61 = vcombine.low %v3021_v49, %v4201_v27  ;;  %v747_v58 = vor.u32 %v746_v13, %v742_v59  ;;  %v307_v13 = vld [vmem:[%s3584_s19 + $0xb4] sm:$0xe] }
  0xc9   : > { %1814 = vrot.lane.b32.xlu1 %v1753_v35, %s3538_s30  ;;  %v2168_v35 = vsel %vm2148_vm9, %v2135_v57, %v4273_v62  ;;  %v1908_v62 = vsel %vm845_vm0, %v1906_v31, %v1907_v38  ;;  %v756_v10 = vshll.u32 %v4378_v50, 16  ;;  %v1884_v27 = vsel %vm845_vm0, %v1882_v52, %v1883_v17 }
  0xca   : > { %1798 = vrot.lane.b32.xlu0 %v1657_v42, %s3538_s30  ;;  %v651_v12 = vor.u32 %v650_v33, %v646_v37  ;;  %v655_v53 = vrot.slane %v653_v0, 1  ;;  %v4406_v42 = vld [vmem:[%s3584_s19 + $0x5c] ss:$0 sps:$4 sm:$0x11]   ;;  %v660_v47 = vshll.u32 %v4385_v34, 16  ;;  %v1909_v31 = vrot.slane %v3173_v19, 1 }
  0xcb   : > { %v1937_v45 = vpop.permute.xlu1 %1936  ;;  %v1910_v38 = vrot.slane %v4244_v2, 1  ;;  %v1885_v6 = vrot.slane %v3165_v61, 1  ;;  %v1886_v40 = vrot.slane %v4254_v8, 1  ;;  %v752_v52 = vsel %vm572_vm1, %v747_v58, %v751_v48  ;;  %v306_v8 = vld [vmem:[%s3584_s19 + $0xa8] sm:$0xe] }
  0xcc   : > { %v2201_v30 = vsel %vm2181_vm10, %v2168_v35, %v1937_v45  ;;  %v1921_v41 = vpop.permute.xlu0 %1920  ;;  %v754_v17 = vshrl.u32 %v4378_v50, 16  ;;  %v758_v26 = vrot.slane %v756_v10, 1  ;;  %v656_v22 = vsel %vm572_vm1, %v651_v12, %v655_v53  ;;  %v299_v35 = vld [vmem:[%s3584_s19 + $0x54] sm:$0xe] }
  0xcd   : > { %v2185_v55 = vsel %vm2181_vm10, %v2152_v7, %v1921_v41  ;;  %1816 = vrot.lane.b32.xlu1 %v1765_v44, %s3538_s30  ;;  %3305 = vmatmul.mubr.msk.bf16.vlgmr.msra.gmra.mrb[0].mxu1 %vm2241_vm11, %v2201_v30  ;;  %v658_v63 = vshrl.u32 %v4385_v34, 16  ;;  %v662_v29 = vrot.slane %v660_v47, 1  ;;  %v665_v2 = vshll.u32 %v4406_v42, 16  ;;  %v2916_v48 = vld [vmem:[%s3584_s19 + $0x54] sm:$0xf] }
  0xce   : > { %1800 = vrot.lane.b32.xlu0 %v1669_v56, %s3538_s30  ;;  %3289 = vmatmul.mubr.msk.bf16.vlgmr.msra.gmra.mrb[0].mxu0 %vm2241_vm11, %v2185_v55  ;;  %v761_v56 = vshll.u32 %v4399_v4, 16  ;;  %v1911_v39 = vsel %vm845_vm0, %v1909_v31, %v1910_v38  ;;  %v759_v9 = vor.u32 %v758_v26, %v754_v17  ;;  %v3078_v37 = vcombine.low %v306_v8, %v4278_v14  ;;  %v2932_v55 = vld [vmem:[%s3584_s19 + $0xb4] sm:$0xf]  ;;  %v2934_v38 = vld [vmem:[%s3584_s19 + $0xc0] sm:$0xf] }
  0xcf   : > { %v4402_v3 = vpop.permute.xlu1 %787  ;;  %v1887_v1 = vsel %vm845_vm0, %v1885_v6, %v1886_v40  ;;  %v663_v57 = vor.u32 %v662_v29, %v658_v63  ;;  %v667_v21 = vrot.slane %v665_v2, 1  ;;  %v3070_v49 = vcombine.low %v298_v43, %v4288_v23  ;;  %v4471_v6 = vld [vmem:[%s3584_s19 + $0xc4] sm:$0xf] }
  0xd0   : > { %v4409_v44 = vpop.permute.xlu0 %771  ;;  %v763_v5 = vrot.slane %v761_v56, 1  ;;  %v888_v45 = vrot.slane %v3078_v37, 1  ;;  %v889_v33 = vrot.slane %v4320_v16, 1  ;;  %v3079_v7 = vcombine.low %v307_v13, %v4349_v25  ;;  %v4457_v16 = vld [vmem:[%s3584_s19 + $0x58] sm:$0xf] }
  0xd1   : > { %1942 = vrot.lane.b32.xlu1 %v1908_v62, %s3539_s4  ;;  %v668_v23 = vsel %vm572_vm1, %v663_v57, %v667_v21  ;;  %v864_v41 = vrot.slane %v3070_v49, 1  ;;  %v865_v19 = vrot.slane %v4329_v36, 1  ;;  %v3071_v61 = vcombine.low %v299_v35, %v4361_v18  ;;  %v4451_v62 = vld [vmem:[%s3584_s19 + $0xb8] sm:$0xf]  ;;  %v4477_v17 = vld [vmem:[%s3584_s19 + $0x64] sm:$0xf] }
  0xd2   : > { %1926 = vrot.lane.b32.xlu0 %v1884_v27, %s3539_s4  ;;  %v764_v14 = vsel %vm572_vm1, %v759_v9, %v763_v5  ;;  %v890_v36 = vsel %vm845_vm0, %v888_v45, %v889_v33  ;;  %v891_v25 = vrot.slane %v3079_v7, 1  ;;  %v892_v18 = vrot.slane %v4399_v4, 1  ;;  %v4481_v4 = vld [vmem:[%s3584_s19 + $0xbc] ss:$0 sps:$4 sm:$0x11]  }
  0xd3   : > { %v4418_v20 = vpop.permute.xlu1 %914  ;;  %v3094_v10 = vcombine.low %v2932_v55, %v4451_v62  ;;  %v866_v12 = vsel %vm845_vm0, %v864_v41, %v865_v19  ;;  %v867_v53 = vrot.slane %v3071_v61, 1  ;;  %v868_v47 = vrot.slane %v4406_v42, 1  ;;  %v4505_v35 = vld [vmem:[%s3584_s19 + $0x68] ss:$0 sps:$4 sm:$0x11]  }
  0xd4   : > { %v4424_v59 = vpop.permute.xlu0 %898  ;;  %v3086_v31 = vcombine.low %v2916_v48, %v4457_v16  ;;  %v893_v26 = vsel %vm845_vm0, %v891_v25, %v892_v18  ;;  %v3095_v42 = vcombine.low %v2934_v38, %v4471_v6  ;;  %v1262_v9 = vshll.u32 %v4481_v4, 16 }
  0xd5   : > { %793 = vrot.lane.b32.xlu1 %v752_v52, %s3534_s22  ;;  %v2918_v52 = vld [vmem:[%s3584_s19 + $0x60] sm:$0xf]  ;;  %v1257_v56 = vshll.u32 %v3094_v10, 16  ;;  %v869_v29 = vsel %vm845_vm0, %v867_v53, %v868_v47  ;;  %v1178_v18 = vshll.u32 %v4505_v35, 16  ;;  %v2958_v53 = vld [vmem:[%s3584_s19 + $0x54] sm:$0xe] }
  0xd6   : > { %777 = vrot.lane.b32.xlu0 %v656_v22, %s3534_s22  ;;  %v4487_v22 = vld [vmem:[%s3584_s19 + $0x5c] ss:$0 sps:$4 sm:$0x11]   ;;  %v3087_v2 = vcombine.low %v2918_v52, %v4477_v17  ;;  %v1161_v8 = vshll.u32 %v3086_v31, 16  ;;  %v1269_v57 = vshll.u32 %v3095_v42, 16  ;;  %v1159_v49 = vshrl.u32 %v3086_v31, 16 }
  0xd7   : > { %v4431_v0 = vpop.permute.xlu1 %916  ;;  %v1259_v5 = vrot.slane %v1257_v56, 1  ;;  %v1166_v37 = vshll.u32 %v4487_v22, 16  ;;  %v1264_v33 = vrot.slane %v1262_v9, 1  ;;  %v1267_v7 = vshrl.u32 %v3095_v42, 16  ;;  %v2967_v9 = vld [vmem:[%s3584_s19 + $0xc0] sm:$0xe] }
  0xd8   : > { %v4436_v60 = vpop.permute.xlu0 %900  ;;  %v1163_v13 = vrot.slane %v1161_v8, 1  ;;  %v1271_v19 = vrot.slane %v1269_v57, 1  ;;  %v1180_v8 = vrot.slane %v1178_v18, 1 }
  0xd9   : > { %1944 = vrot.lane.b32.xlu1 %v1911_v39, %s3539_s4  ;;  %v1255_v39 = vshrl.u32 %v3094_v10, 16  ;;  %v1168_v41 = vrot.slane %v1166_v37, 1  ;;  %v4533_v37 = vld [vmem:[%s3584_s19 + $0xc4] sm:$0xf] }
  0xda   : > { %1928 = vrot.lane.b32.xlu0 %v1887_v1, %s3539_s4  ;;  %v4500_v1 = vld [vmem:[%s3584_s19 + $0xc8] ss:$0 sps:$4 sm:$0x11]   ;;  %v1164_v48 = vor.u32 %v1163_v13, %v1159_v49  ;;  %v3127_v13 = vcombine.low %v2967_v9, %v4471_v6 }
  0xdb   : > { %v4444_v30 = vpop.permute.xlu1 %1026  ;;  %v1274_v61 = vshll.u32 %v4500_v1, 16  ;;  %v1404_v18 = vrot.slane %v4500_v1, 1 }
  0xdc   : > { %v4453_v58 = vpop.permute.xlu0 %1010  ;;  %v1169_v56 = vsel %vm572_vm1, %v1164_v48, %v1168_v41  ;;  %v2998_v48 = vld [vmem:[%s3584_s19 + $0xcc] sm:$0xf] }
  0xdd   : > { %795 = vrot.lane.b32.xlu1 %v764_v14, %s3534_s22  ;;  %v1173_v14 = vshll.u32 %v3087_v2, 16  ;;  %v1276_v38 = vrot.slane %v1274_v61, 1 }
  0xde   : > { %779 = vrot.lane.b32.xlu0 %v668_v23, %s3534_s22  ;;  %v1260_v23 = vor.u32 %v1259_v5, %v1255_v39  ;;  %v3118_v39 = vcombine.low %v2958_v53, %v4457_v16  ;;  %v2996_v5 = vld [vmem:[%s3584_s19 + $0xc0] sm:$0xf]  ;;  %v1377_v16 = vrot.slane %v4487_v22, 1  ;;  %v4556_v22 = vld [vmem:[%s3584_s19 + $0xd0] sm:$0xf] }
  0xdf   : > { %v4464_v27 = vpop.permute.xlu1 %1028  ;;  %v1175_v25 = vrot.slane %v1173_v14, 1  ;;  %v2980_v14 = vld [vmem:[%s3584_s19 + $0x60] sm:$0xf] }
  0xe0   : > { %v4473_v40 = vpop.permute.xlu0 %1012  ;;  %v1265_v47 = vsel %vm572_vm1, %v1260_v23, %v1264_v33  ;;  %v4543_v33 = vld [vmem:[%s3584_s19 + $0x64] sm:$0xf]  ;;  %v1376_v41 = vrot.slane %v3118_v39, 1  ;;  %v4578_v39 = vld [vmem:[%s3584_s19 + $0x68] ss:$0 sps:$4 sm:$0x11]  }
  0xe1   : > { %922 = vrot.lane.b32.xlu1 %v890_v36, %s3533_s21  ;;  %v1171_v36 = vshrl.u32 %v3087_v2, 16  ;;  %v3134_v6 = vcombine.low %v2980_v14, %v4543_v33  ;;  %v1678_v14 = vshll.u32 %v4578_v39, 16 }
  0xe2   : > { %906 = vrot.lane.b32.xlu0 %v866_v12, %s3533_s21  ;;  %v2966_v12 = vld [vmem:[%s3584_s19 + $0xb4] sm:$0xe]  ;;  %v1378_v53 = vsel %vm845_vm0, %v1376_v41, %v1377_v16  ;;  %v1972_v41 = vsel %vm1950_vm3, %v3772_v51, %v4343_v24 }
  0xe3   : > { %v4489_v63 = vpop.permute.xlu1 %1298  ;;  %v3126_v52 = vcombine.low %v2966_v12, %v4451_v62  ;;  %v1401_v62 = vrot.slane %v4481_v4, 1  ;;  %v1673_v9 = vshll.u32 %v3134_v6, 16 }
  0xe4   : > { %v4493_v43 = vpop.permute.xlu0 %1282 }
  0xe5   : > { %924 = vrot.lane.b32.xlu1 %v893_v26, %s3533_s21  ;;  %v1400_v49 = vrot.slane %v3126_v52, 1 }
  0xe6   : > { %908 = vrot.lane.b32.xlu0 %v869_v29, %s3533_s21  ;;  %v1176_v29 = vor.u32 %v1175_v25, %v1171_v36  ;;  %v4559_v36 = vld [vmem:[%s3584_s19 + $0xc8] ss:$0 sps:$4 sm:$0x11]   ;;  %v1403_v25 = vrot.slane %v3127_v13, 1 }
  0xe7   : > { %v4502_v21 = vpop.permute.xlu1 %1300  ;;  %v1774_v1 = vshll.u32 %v4559_v36, 16 }
  0xe8   : > { %v4507_v45 = vpop.permute.xlu0 %1284  ;;  %v1181_v23 = vsel %vm572_vm1, %v1176_v29, %v1180_v8  ;;  %v4572_v29 = vcombine.low %v2998_v48, %v4556_v22  ;;  %v4575_v8 = vld [vmem:[%s3584_s19 + $0x70] sm:$0xf]  ;;  %v1671_v48 = vshrl.u32 %v3134_v6, 16 }
  0xe9   : > { %1034 = vrot.lane.b32.xlu1 %v3094_v10, %s3532_s20 }
  0xea   : > { %1018 = vrot.lane.b32.xlu0 %v3086_v31, %s3532_s20  ;;  %v1272_v31 = vor.u32 %v1271_v19, %v1267_v7  ;;  %v3142_v19 = vcombine.low %v2996_v5, %v4533_v37 }
  0xeb   : > { %v4512_v55 = vpop.permute.xlu1 %1426 }
  0xec   : > { %v4516_v10 = vpop.permute.xlu0 %1410  ;;  %v1277_v57 = vsel %vm572_vm1, %v1272_v31, %v1276_v38  ;;  %v1380_v31 = vrot.slane %v4505_v35, 1  ;;  %v2982_v38 = vld [vmem:[%s3584_s19 + $0x6c] sm:$0xf]  ;;  %v1769_v52 = vshll.u32 %v3142_v19, 16  ;;  %v1405_v35 = vsel %vm845_vm0, %v1403_v25, %v1404_v18 }
  0xed   : > { %1036 = vrot.lane.b32.xlu1 %v3095_v42, %s3532_s20  ;;  %v1956_v25 = vsel %vm1950_vm3, %v3775_v54, %v4355_v11  ;;  %v2005_v18 = vsel %vm1983_vm4, %v1972_v41, %v4418_v20 }
  0xee   : > { %1020 = vrot.lane.b32.xlu0 %v3087_v2, %s3532_s20  ;;  %v2959_v2 = vld [vmem:[%s3584_s19 + $0x60] sm:$0xe]  ;;  %v1771_v16 = vrot.slane %v1769_v52, 1  ;;  %v1989_v51 = vsel %vm1983_vm4, %v1956_v25, %v4424_v59  ;;  %v2038_v24 = vsel %vm2016_vm5, %v2005_v18, %v4444_v30 }
  0xef   : > { %v4523_v26 = vpop.permute.xlu1 %1428  ;;  %v3119_v4 = vcombine.low %v2959_v2, %v4477_v17  ;;  %v1402_v17 = vsel %vm845_vm0, %v1400_v49, %v1401_v62  ;;  %v4585_v2 = vld [vmem:[%s3584_s19 + $0xd4] ss:$0 sps:$4 sm:$0x11]   ;;  %v1767_v49 = vshrl.u32 %v3142_v19, 16  ;;  %v2022_v20 = vsel %vm2016_vm5, %v1989_v51, %v4453_v58  ;;  %v3030_v58 = vld [vmem:[%s3584_s19 + $0xc0] sm:$0xe] }
  0xf0   : > { %v4528_v42 = vpop.permute.xlu0 %1412  ;;  %v2071_v52 = vsel %vm2049_vm6, %v2038_v24, %v4489_v63  ;;  %v2055_v59 = vsel %vm2049_vm6, %v2022_v20, %v4493_v43  ;;  %v3023_v24 = vld [vmem:[%s3584_s19 + $0x6c] sm:$0xe] }
  0xf1   : > { %1306 = vrot.lane.b32.xlu1 %v1265_v47, %s3535_s23  ;;  %v1379_v47 = vrot.slane %v3119_v4, 1  ;;  %v1776_v4 = vrot.slane %v1774_v1, 1  ;;  %v1772_v54 = vor.u32 %v1771_v16, %v1767_v49  ;;  %v2104_v30 = vsel %vm2082_vm7, %v2071_v52, %v4512_v55 }
  0xf2   : > { %1290 = vrot.lane.b32.xlu0 %v1169_v56, %s3535_s23  ;;  %v2088_v63 = vsel %vm2082_vm7, %v2055_v59, %v4516_v10 }
  0xf3   : > { %v4545_v7 = vpop.permute.xlu1 %1538  ;;  %v1381_v62 = vsel %vm845_vm0, %v1379_v47, %v1380_v31  ;;  %v1786_v47 = vshll.u32 %v4585_v2, 16  ;;  %v4606_v31 = vld [vmem:[%s3584_s19 + $0x74] ss:$0 sps:$4 sm:$0x11]   ;;  %v1777_v41 = vsel %vm572_vm1, %v1772_v54, %v1776_v4  ;;  %v1958_v4 = vsel %vm1950_vm3, %v3818_v32, %v4409_v44 }
  0xf4   : > { %v4550_v61 = vpop.permute.xlu0 %1522  ;;  %v2137_v16 = vsel %vm2115_vm8, %v2104_v30, %v4545_v7  ;;  %v1690_v43 = vshll.u32 %v4606_v31, 16 }
  0xf5   : > { %1308 = vrot.lane.b32.xlu1 %v1277_v57, %s3535_s23  ;;  %v4589_v57 = vcombine.low %v2982_v38, %v4575_v8  ;;  %v2121_v55 = vsel %vm2115_vm8, %v2088_v63, %v4550_v61  ;;  %v1974_v61 = vsel %vm1950_vm3, %v3813_v28, %v4402_v3  ;;  %v1991_v3 = vsel %vm1983_vm4, %v1958_v4, %v4436_v60 }
  0xf6   : > { %1292 = vrot.lane.b32.xlu0 %v1181_v23, %s3535_s23  ;;  %v1781_v23 = vshll.u32 %v4572_v29, 16  ;;  %v1692_v44 = vrot.slane %v1690_v43, 1  ;;  %v1913_v60 = vrot.slane %v4559_v36, 1 }
  0xf7   : > { %v4564_v12 = vpop.permute.xlu1 %1540  ;;  %v1685_v11 = vshll.u32 %v4589_v57, 16  ;;  %v1683_v49 = vshrl.u32 %v4589_v57, 16 }
  0xf8   : > { %v4569_v56 = vpop.permute.xlu0 %1524 }
  0xf9   : > { %1434 = vrot.lane.b32.xlu1 %v1402_v17, %s3536_s24  ;;  %v1675_v17 = vrot.slane %v1673_v9, 1  ;;  %v1680_v9 = vrot.slane %v1678_v14, 1  ;;  %v1788_v14 = vrot.slane %v1786_v47, 1  ;;  %v3031_v47 = vld [vmem:[%s3584_s19 + $0xcc] sm:$0xe] }
  0xfa   : > { %1418 = vrot.lane.b32.xlu0 %v1378_v53, %s3536_s24  ;;  %v1779_v53 = vshrl.u32 %v4572_v29, 16  ;;  %v3175_v52 = vcombine.low %v3031_v47, %v4556_v22 }
  0xfb   : > { %v1811_v5 = vpop.permute.xlu1 %1810 }
  0xfc   : > { %v1795_v13 = vpop.permute.xlu0 %1794 }
  0xfd   : > { %1436 = vrot.lane.b32.xlu1 %v1405_v35, %s3536_s24  ;;  %v1783_v35 = vrot.slane %v1781_v23, 1  ;;  %v2154_v10 = vsel %vm2148_vm9, %v2121_v55, %v1795_v13 }
  0xfe   : > { %1420 = vrot.lane.b32.xlu0 %v1381_v62, %s3536_s24  ;;  %v1676_v62 = vor.u32 %v1675_v17, %v1671_v48  ;;  %v1687_v48 = vrot.slane %v1685_v11, 1  ;;  %v3022_v17 = vld [vmem:[%s3584_s19 + $0x60] sm:$0xe] }
  0xff   : > { %v4612_v38 = vpop.permute.xlu1 %1812  ;;  %v1784_v18 = vor.u32 %v1783_v35, %v1779_v53  ;;  %v3166_v28 = vcombine.low %v3022_v17, %v4543_v33  ;;  %v3167_v35 = vcombine.low %v3023_v24, %v4575_v8  ;;  %v1916_v8 = vrot.slane %v4585_v2, 1 }
 0x100   : > { %v4619_v1 = vpop.permute.xlu0 %1796  ;;  %v1681_v13 = vsel %vm572_vm1, %v1676_v62, %v1680_v9  ;;  %v1688_v32 = vor.u32 %v1687_v48, %v1683_v49  ;;  %v1892_v49 = vrot.slane %v4606_v31, 1 }
 0x101   : > { %1546 = vrot.lane.b32.xlu1 %v3142_v19, %s3537_s27  ;;  %v2170_v19 = vsel %vm2148_vm9, %v2137_v16, %v1811_v5  ;;  %v1789_v33 = vsel %vm572_vm1, %v1784_v18, %v1788_v14  ;;  %v1888_v36 = vrot.slane %v3166_v28, 1  ;;  %v1891_v62 = vrot.slane %v3167_v35, 1 }
 0x102   : > { %1530 = vrot.lane.b32.xlu0 %v3134_v6, %s3537_s27  ;;  %v3174_v6 = vcombine.low %v3030_v58, %v4533_v37  ;;  %v2007_v37 = vsel %vm1983_vm4, %v1974_v61, %v4431_v0  ;;  %v2024_v0 = vsel %vm2016_vm5, %v1991_v3, %v4473_v40  ;;  %v1889_v40 = vrot.slane %v4578_v39, 1 }
 0x103   : > { %v1939_v23 = vpop.permute.xlu1 %1938  ;;  %v1693_v39 = vsel %vm572_vm1, %v1688_v32, %v1692_v44  ;;  %v1893_v14 = vsel %vm845_vm0, %v1891_v62, %v1892_v49  ;;  %v4922_v44 = vld [vmem:[#allocation3_spill] sm:$0xff] }
 0x104   : > { %v2203_v25 = vsel %vm2181_vm10, %v2170_v19, %v1939_v23  ;;  %v1923_v7 = vpop.permute.xlu0 %1922  ;;  %v1912_v11 = vrot.slane %v3174_v6, 1 }
 0x105   : > { %v2187_v5 = vsel %vm2181_vm10, %v2154_v10, %v1923_v7  ;;  %1548 = vrot.lane.b32.xlu1 %v4572_v29, %s3537_s27  ;;  %3308 = vmatprep.mubr.msk.bf16.mxu1 %vm2241_vm11, %v2203_v25  ;;  %v2040_v29 = vsel %vm2016_vm5, %v2007_v37, %v4464_v27  ;;  %v2057_v27 = vsel %vm2049_vm6, %v2024_v0, %v4507_v45 }
 0x106   : > { %1532 = vrot.lane.b32.xlu0 %v4589_v57, %s3537_s27  ;;  %3292 = vmatprep.mubr.msk.bf16.mxu0 %vm2241_vm11, %v2187_v5  ;;  %v2073_v57 = vsel %vm2049_vm6, %v2040_v29, %v4502_v21  ;;  %v2090_v21 = vsel %vm2082_vm7, %v2057_v27, %v4528_v42  ;;  %v1914_v22 = vsel %vm845_vm0, %v1912_v11, %v1913_v60  ;;  %v4921_v29 = vld [vmem:[#allocation2_spill] sm:$0xff] }
 0x107   : > { %v4663_v53 = vpop.permute.xlu1 %789  ;;  %v2106_v54 = vsel %vm2082_vm7, %v2073_v57, %v4523_v26  ;;  %v2123_v45 = vsel %vm2115_vm8, %v2090_v21, %v4569_v56  ;;  %v1915_v56 = vrot.slane %v3175_v52, 1 }
 0x108   : > { %v4670_v51 = vpop.permute.xlu0 %773  ;;  %v2139_v20 = vsel %vm2115_vm8, %v2106_v54, %v4564_v12  ;;  %v2156_v42 = vsel %vm2148_vm9, %v2123_v45, %v4619_v1  ;;  %v1890_v1 = vsel %vm845_vm0, %v1888_v36, %v1889_v40  ;;  %v1976_v32 = vsel %vm1950_vm3, %v4921_v29, %v4663_v53 }
 0x109   : > { %1818 = vrot.lane.b32.xlu1 %v1777_v41, %s3538_s30  ;;  %v2172_v26 = vsel %vm2148_vm9, %v2139_v20, %v4612_v38  ;;  %v1917_v63 = vsel %vm845_vm0, %v1915_v56, %v1916_v8  ;;  %v1960_v47 = vsel %vm1950_vm3, %v4922_v44, %v4670_v51 }
 0x10a   : > { %1802 = vrot.lane.b32.xlu0 %v1681_v13, %s3538_s30 }
 0x10b   : > { %v1941_v9 = vpop.permute.xlu1 %1940 }
 0x10c   : > { %v2205_v12 = vsel %vm2181_vm10, %v2172_v26, %v1941_v9  ;;  %v1925_v59 = vpop.permute.xlu0 %1924  ;;  %v4923_v9 = vld [vmem:[#allocation4_spill] sm:$0xff] }
 0x10d   : > { %v2189_v30 = vsel %vm2181_vm10, %v2156_v42, %v1925_v59  ;;  %1820 = vrot.lane.b32.xlu1 %v1789_v33, %s3538_s30  ;;  %3309 = vmatmul.mubr.msk.bf16.gmra.mrb[4].mxu1 %vm2241_vm11, %v2205_v12  ;;  %v4924_v42 = vld [vmem:[#allocation5_spill] sm:$0xff] }
 0x10e   : > { %1804 = vrot.lane.b32.xlu0 %v1693_v39, %s3538_s30  ;;  %3293 = vmatmul.mubr.msk.bf16.gmra.mrb[4].mxu0 %vm2241_vm11, %v2189_v30 }
 0x10f   : > { %v792_v38 = vpop.permute.xlu1 %791 }
 0x110   : > { %v776_v58 = vpop.permute.xlu0 %775  ;;  %v1978_v39 = vsel %vm1950_vm3, %v4923_v9, %v792_v38 }
 0x111   : > { %1946 = vrot.lane.b32.xlu1 %v1914_v22, %s3539_s4  ;;  %v1962_v12 = vsel %vm1950_vm3, %v4924_v42, %v776_v58 }
 0x112   : > { %1930 = vrot.lane.b32.xlu0 %v1890_v1, %s3539_s4 }
 0x113   : > { %v919_v16 = vpop.permute.xlu1 %918 }
 0x114   : > { %v903_v43 = vpop.permute.xlu0 %902  ;;  %v2009_v0 = vsel %vm1983_vm4, %v1976_v32, %v919_v16 }
 0x115   : > { %1948 = vrot.lane.b32.xlu1 %v1917_v63, %s3539_s4  ;;  %v1993_v57 = vsel %vm1983_vm4, %v1960_v47, %v903_v43 }
 0x116   : > { %1932 = vrot.lane.b32.xlu0 %v1893_v14, %s3539_s4 }
 0x117   : > { %v921_v2 = vpop.permute.xlu1 %920 }
 0x118   : > { %v905_v55 = vpop.permute.xlu0 %904  ;;  %v2011_v59 = vsel %vm1983_vm4, %v1978_v39, %v921_v2 }
 0x119   : > { %v1995_v30 = vsel %vm1983_vm4, %v1962_v12, %v905_v55 }
 0x11b   : > { %v1031_v19 = vpop.permute.xlu1 %1030 }
 0x11c   : > { %v1015_v23 = vpop.permute.xlu0 %1014  ;;  %v2042_v33 = vsel %vm2016_vm5, %v2009_v0, %v1031_v19 }
 0x11d   : > { %v2026_v24 = vsel %vm2016_vm5, %v1993_v57, %v1015_v23 }
 0x11f   : > { %v1033_v31 = vpop.permute.xlu1 %1032 }
 0x120   : > { %v1017_v41 = vpop.permute.xlu0 %1016  ;;  %v2044_v22 = vsel %vm2016_vm5, %v2011_v59, %v1033_v31 }
 0x121   : > { %v2028_v8 = vsel %vm2016_vm5, %v1995_v30, %v1017_v41 }
 0x123   : > { %v1303_v48 = vpop.permute.xlu1 %1302 }
 0x124   : > { %v1287_v17 = vpop.permute.xlu0 %1286  ;;  %v2075_v27 = vsel %vm2049_vm6, %v2042_v33, %v1303_v48 }
 0x125   : > { %v2059_v11 = vsel %vm2049_vm6, %v2026_v24, %v1287_v17 }
 0x127   : > { %v1305_v10 = vpop.permute.xlu1 %1304 }
 0x128   : > { %v1289_v25 = vpop.permute.xlu0 %1288  ;;  %v2077_v38 = vsel %vm2049_vm6, %v2044_v22, %v1305_v10 }
 0x129   : > { %v2061_v62 = vsel %vm2049_vm6, %v2028_v8, %v1289_v25 }
 0x12b   : > { %v1431_v7 = vpop.permute.xlu1 %1430 }
 0x12c   : > { %v1415_v18 = vpop.permute.xlu0 %1414  ;;  %v2108_v53 = vsel %vm2082_vm7, %v2075_v27, %v1431_v7 }
 0x12d   : > { %v2092_v40 = vsel %vm2082_vm7, %v2059_v11, %v1415_v18 }
 0x12f   : > { %v1433_v6 = vpop.permute.xlu1 %1432 }
 0x130   : > { %v1417_v61 = vpop.permute.xlu0 %1416  ;;  %v2110_v49 = vsel %vm2082_vm7, %v2077_v38, %v1433_v6 }
 0x131   : > { %v2094_v58 = vsel %vm2082_vm7, %v2061_v62, %v1417_v61 }
 0x133   : > { %v1543_v5 = vpop.permute.xlu1 %1542 }
 0x134   : > { %v1527_v13 = vpop.permute.xlu0 %1526  ;;  %v2141_v51 = vsel %vm2115_vm8, %v2108_v53, %v1543_v5 }
 0x135   : > { %v2125_v21 = vsel %vm2115_vm8, %v2092_v40, %v1527_v13 }
 0x137   : > { %v1545_v4 = vpop.permute.xlu1 %1544 }
 0x138   : > { %v1529_v37 = vpop.permute.xlu0 %1528  ;;  %v2143_v63 = vsel %vm2115_vm8, %v2110_v49, %v1545_v4 }
 0x139   : > { %v2127_v16 = vsel %vm2115_vm8, %v2094_v58, %v1529_v37 }
 0x13b   : > { %v1815_v28 = vpop.permute.xlu1 %1814 }
 0x13c   : > { %v1799_v3 = vpop.permute.xlu0 %1798  ;;  %v2174_v20 = vsel %vm2148_vm9, %v2141_v51, %v1815_v28 }
 0x13d   : > { %v2158_v52 = vsel %vm2148_vm9, %v2125_v21, %v1799_v3 }
 0x13f   : > { %v1817_v60 = vpop.permute.xlu1 %1816 }
 0x140   : > { %v1801_v54 = vpop.permute.xlu0 %1800  ;;  %v2176_v14 = vsel %vm2148_vm9, %v2143_v63, %v1817_v60 }
 0x141   : > { %v2160_v2 = vsel %vm2148_vm9, %v2127_v16, %v1801_v54 }
 0x143   : > { %v1943_v36 = vpop.permute.xlu1 %1942 }
 0x144   : > { %v2207_v45 = vsel %vm2181_vm10, %v2174_v20, %v1943_v36  ;;  %v1927_v26 = vpop.permute.xlu0 %1926 }
 0x145   : > { %v2191_v35 = vsel %vm2181_vm10, %v2158_v52, %v1927_v26  ;;  %3312 = vmatprep.mubr.msk.bf16.mxu1 %vm2241_vm11, %v2207_v45 }
 0x146   : > { %3296 = vmatprep.mubr.msk.bf16.mxu0 %vm2241_vm11, %v2191_v35 }
 0x147   : > { %v794_v56 = vpop.permute.xlu1 %793 }
 0x148   : > { %v778_v1 = vpop.permute.xlu0 %777  ;;  %v1980_v24 = vsel %vm1950_vm3, %v4303_v46, %v794_v56 }
 0x149   : > { %v1964_v27 = vsel %vm1950_vm3, %v4312_v15, %v778_v1 }
 0x14b   : > { %v1945_v43 = vpop.permute.xlu1 %1944 }
 0x14c   : > { %v2209_v55 = vsel %vm2181_vm10, %v2176_v14, %v1945_v43  ;;  %v1929_v19 = vpop.permute.xlu0 %1928 }
 0x14d   : > { %v2193_v23 = vsel %vm2181_vm10, %v2160_v2, %v1929_v19  ;;  %3313 = vmatmul.mubr.msk.bf16.gmra.mrb[8].mxu1 %vm2241_vm11, %v2209_v55  ;;  %v4796_v19 = vld [vmem:[%s4911_s2] ss:$0 sm:$0xff] }
 0x14e   : > { %3297 = vmatmul.mubr.msk.bf16.gmra.mrb[8].mxu0 %vm2241_vm11, %v2193_v23 }
 0x14f   : > { %v796_v31 = vpop.permute.xlu1 %795 }
 0x150   : > { %v780_v41 = vpop.permute.xlu0 %779  ;;  %v1982_v36 = vsel %vm1950_vm3, %v4378_v50, %v796_v31 }
 0x151   : > { %v1966_v15 = vsel %vm1950_vm3, %v4385_v34, %v780_v41 }
 0x153   : > { %v923_v48 = vpop.permute.xlu1 %922 }
 0x154   : > { %v907_v17 = vpop.permute.xlu0 %906  ;;  %v2013_v54 = vsel %vm1983_vm4, %v1980_v24, %v923_v48 }
 0x155   : > { %v1997_v11 = vsel %vm1983_vm4, %v1964_v27, %v907_v17 }
 0x157   : > { %v925_v10 = vpop.permute.xlu1 %924 }
 0x158   : > { %v909_v25 = vpop.permute.xlu0 %908  ;;  %v2015_v45 = vsel %vm1983_vm4, %v1982_v36, %v925_v10 }
 0x159   : > { %v1999_v39 = vsel %vm1983_vm4, %v1966_v15, %v909_v25 }
 0x15b   : > { %v1035_v7 = vpop.permute.xlu1 %1034 }
 0x15c   : > { %v1019_v18 = vpop.permute.xlu0 %1018  ;;  %v2046_v53 = vsel %vm2016_vm5, %v2013_v54, %v1035_v7 }
 0x15d   : > { %v2030_v51 = vsel %vm2016_vm5, %v1997_v11, %v1019_v18 }
 0x15f   : > { %v1037_v6 = vpop.permute.xlu1 %1036 }
 0x160   : > { %v1021_v61 = vpop.permute.xlu0 %1020  ;;  %v2048_v35 = vsel %vm2016_vm5, %v2015_v45, %v1037_v6 }
 0x161   : > { %v2032_v59 = vsel %vm2016_vm5, %v1999_v39, %v1021_v61 }
 0x163   : > { %v1307_v5 = vpop.permute.xlu1 %1306 }
 0x164   : > { %v1291_v13 = vpop.permute.xlu0 %1290  ;;  %v2079_v21 = vsel %vm2049_vm6, %v2046_v53, %v1307_v5 }
 0x165   : > { %v2063_v46 = vsel %vm2049_vm6, %v2030_v51, %v1291_v13 }
 0x167   : > { %v1309_v4 = vpop.permute.xlu1 %1308 }
 0x168   : > { %v1293_v37 = vpop.permute.xlu0 %1292  ;;  %v2081_v30 = vsel %vm2049_vm6, %v2048_v35, %v1309_v4 }
 0x169   : > { %v2065_v8 = vsel %vm2049_vm6, %v2032_v59, %v1293_v37 }
 0x16b   : > { %v1435_v28 = vpop.permute.xlu1 %1434 }
 0x16c   : > { %v1419_v3 = vpop.permute.xlu0 %1418  ;;  %v2112_v52 = vsel %vm2082_vm7, %v2079_v21, %v1435_v28 }
 0x16d   : > { %v2096_v26 = vsel %vm2082_vm7, %v2063_v46, %v1419_v3 }
 0x16f   : > { %v1437_v29 = vpop.permute.xlu1 %1436 }
 0x170   : > { %v1421_v32 = vpop.permute.xlu0 %1420  ;;  %v2114_v38 = vsel %vm2082_vm7, %v2081_v30, %v1437_v29 }
 0x171   : > { %v2098_v62 = vsel %vm2082_vm7, %v2065_v8, %v1421_v32 }
 0x173   : > { %v1547_v44 = vpop.permute.xlu1 %1546 }
 0x174   : > { %v1531_v47 = vpop.permute.xlu0 %1530  ;;  %v2145_v9 = vsel %vm2115_vm8, %v2112_v52, %v1547_v44 }
 0x175   : > { %v2129_v42 = vsel %vm2115_vm8, %v2096_v26, %v1531_v47 }
 0x177   : > { %v1549_v0 = vpop.permute.xlu1 %1548 }
 0x178   : > { %v1533_v57 = vpop.permute.xlu0 %1532  ;;  %v2147_v49 = vsel %vm2115_vm8, %v2114_v38, %v1549_v0 }
 0x179   : > { %v2131_v58 = vsel %vm2115_vm8, %v2098_v62, %v1533_v57 }
 0x17b   : > { %v1819_v33 = vpop.permute.xlu1 %1818 }
 0x17c   : > { %v1803_v60 = vpop.permute.xlu0 %1802  ;;  %v2178_v50 = vsel %vm2148_vm9, %v2145_v9, %v1819_v33 }
 0x17d   : > { %v2162_v34 = vsel %vm2148_vm9, %v2129_v42, %v1803_v60 }
 0x17f   : > { %v1821_v40 = vpop.permute.xlu1 %1820 }
 0x180   : > { %v1805_v20 = vpop.permute.xlu0 %1804  ;;  %v2180_v63 = vsel %vm2148_vm9, %v2147_v49, %v1821_v40 }
 0x181   : > { %v2164_v14 = vsel %vm2148_vm9, %v2131_v58, %v1805_v20 }
 0x183   : > { %v1947_v12 = vpop.permute.xlu1 %1946 }
 0x184   : > { %v2211_v22 = vsel %vm2181_vm10, %v2178_v50, %v1947_v12  ;;  %v1931_v56 = vpop.permute.xlu0 %1930 }
 0x185   : > { %v2195_v1 = vsel %vm2181_vm10, %v2162_v34, %v1931_v56  ;;  %3316 = vmatprep.mubr.msk.bf16.mxu1 %vm2241_vm11, %v2211_v22 }
 0x186   : > { %3300 = vmatprep.mubr.msk.bf16.mxu0 %vm2241_vm11, %v2195_v1 }
 0x187   : > { %v1949_v16 = vpop.permute.xlu1 %1948 }
 0x188   : > { %v2213_v43 = vsel %vm2181_vm10, %v2180_v63, %v1949_v16  ;;  %v1933_v2 = vpop.permute.xlu0 %1932 }
 0x189   : > { %v2197_v55 = vsel %vm2181_vm10, %v2164_v14, %v1933_v2  ;;  %3317 = vmatmul.mubr.msk.bf16.gmra.mrb[12].mxu1 %vm2241_vm11, %v2213_v43 }
 0x18a   : > { %3301 = vmatmul.mubr.msk.bf16.gmra.mrb[12].mxu0 %vm2241_vm11, %v2197_v55 }
 0x1a0   : > { %v3306_v23 = vpop.f32.mrb[0].mxu1 }
 0x1a1   : > { %v3290_v31 = vpop.f32.mrb[0].mxu0  ;;  %v2385_v41 = vadd.f32 %v3306_v23, %v4796_v19  ;;  %v2376_v48 = vpop.f32.mrb[1].mxu1 }
 0x1a2   : > { %v2321_v17 = vadd.f32 %v3290_v31, %v4796_v19  ;;  %v2312_v10 = vpop.f32.mrb[1].mxu0  ;;  %v2377_v25 = vadd.f32 %v4796_v19, %v2376_v48  ;;  %v3307_v7 = vpop.f32.mrb[2].mxu1 }
 0x1a3   : > { %v2457_v18 = vadd.f32 3.0, %v2385_v41  ;;  %v2313_v6 = vadd.f32 %v4796_v19, %v2312_v10  ;;  %v3291_v61 = vpop.f32.mrb[2].mxu0  ;;  %v2388_v5 = vadd.f32 %v3307_v7, %v4796_v19  ;;  %v2379_v13 = vpop.f32.mrb[3].mxu1 }
 0x1a4   : > { %v2441_v4 = vadd.f32 3.0, %v2321_v17  ;;  %v2455_v37 = vadd.f32 3.0, %v2377_v25  ;;  %v2324_v28 = vadd.f32 %v3291_v61, %v4796_v19  ;;  %v2315_v3 = vpop.f32.mrb[3].mxu0  ;;  %v2380_v29 = vadd.f32 %v4796_v19, %v2379_v13 }
 0x1a5   : > { %v2489_v32 = vmax.f32 %v2457_v18, 0.0  ;;  %v2439_v44 = vadd.f32 3.0, %v2313_v6  ;;  %v2458_v47 = vadd.f32 3.0, %v2388_v5  ;;  %v2316_v0 = vadd.f32 %v4796_v19, %v2315_v3 }
 0x1a6   : > { %v2473_v57 = vmax.f32 %v2441_v4, 0.0  ;;  %v2487_v33 = vmax.f32 %v2455_v37, 0.0  ;;  %v2442_v60 = vadd.f32 3.0, %v2324_v28  ;;  %v2456_v24 = vadd.f32 3.0, %v2380_v29 }
 0x1a7   : > { %v2521_v27 = vmin.f32 %v2489_v32, 6.0  ;;  %v2471_v54 = vmax.f32 %v2439_v44, 0.0  ;;  %v2490_v11 = vmax.f32 %v2458_v47, 0.0  ;;  %v2440_v53 = vadd.f32 3.0, %v2316_v0 }
 0x1a8   : > { %v2505_v40 = vmin.f32 %v2473_v57, 6.0  ;;  %v2519_v51 = vmin.f32 %v2487_v33, 6.0  ;;  %v2474_v21 = vmax.f32 %v2442_v60, 0.0  ;;  %v2488_v20 = vmax.f32 %v2456_v24, 0.0 }
 0x1a9   : > { %v2553_v36 = vmul.f32 %v2521_v27, %v2385_v41  ;;  %v2503_v46 = vmin.f32 %v2471_v54, 6.0  ;;  %v2522_v52 = vmin.f32 %v2490_v11, 6.0  ;;  %v2472_v15 = vmax.f32 %v2440_v53, 0.0 }
 0x1aa   : > { %v2537_v45 = vmul.f32 %v2505_v40, %v2321_v17  ;;  %v2551_v26 = vmul.f32 %v2519_v51, %v2377_v25  ;;  %v2506_v9 = vmin.f32 %v2474_v21, 6.0  ;;  %v2520_v39 = vmin.f32 %v2488_v20, 6.0 }
 0x1ab   : > { %v2585_v35 = vmul.f32 0.16666667, %v2553_v36  ;;  %v2535_v42 = vmul.f32 %v2503_v46, %v2313_v6  ;;  %v2554_v50 = vmul.f32 %v2522_v52, %v2388_v5  ;;  %v2504_v12 = vmin.f32 %v2472_v15, 6.0 }
 0x1ac   : > { %v2569_v59 = vmul.f32 0.16666667, %v2537_v45  ;;  %v2583_v30 = vmul.f32 0.16666667, %v2551_v26  ;;  %v2538_v34 = vmul.f32 %v2506_v9, %v2324_v28  ;;  %v2552_v22 = vmul.f32 %v2520_v39, %v2380_v29 }
 0x1ad   : > { %v3249_v56 = vpack.c.bf16 %v2585_v35, %v2585_v35  ;;  %v2567_v8 = vmul.f32 0.16666667, %v2535_v42  ;;  %v2586_v38 = vmul.f32 0.16666667, %v2554_v50  ;;  %v2536_v1 = vmul.f32 %v2504_v12, %v2316_v0 }
 0x1ae   : > { %v3233_v62 = vpack.c.bf16 %v2569_v59, %v2569_v59  ;;  %v3247_v49 = vpack.c.bf16 %v2583_v30, %v2583_v30  ;;  %v2570_v58 = vmul.f32 0.16666667, %v2538_v34  ;;  %v2584_v63 = vmul.f32 0.16666667, %v2552_v22 }
 0x1af   : > { %2746 = vst.msk [vmem:[%s4810_s16 + $0x48] sm:$0xf] %vm2727_vm12, %v3249_v56  ;;  %v3231_v16 = vpack.c.bf16 %v2567_v8, %v2567_v8  ;;  %v3250_v14 = vpack.c.bf16 %v2586_v38, %v2586_v38  ;;  %v2568_v43 = vmul.f32 0.16666667, %v2536_v1 }
 0x1b0   : > { %2730 = vst.msk [vmem:[%s4810_s16 + $0x8] sm:$0xf] %vm2727_vm12, %v3233_v62  ;;  %2744 = vst.msk [vmem:[%s4810_s16 + $0x40] sm:$0xf] %vm2727_vm12, %v3247_v49  ;;  %v3234_v2 = vpack.c.bf16 %v2570_v58, %v2570_v58  ;;  %v3248_v55 = vpack.c.bf16 %v2584_v63, %v2584_v63 }
 0x1b1   : > { %2728 = vst.msk [vmem:[%s4810_s16] sm:$0xf] %vm2727_vm12, %v3231_v16  ;;  %2747 = vst.msk [vmem:[%s4810_s16 + $0x4c] sm:$0xf] %vm2727_vm12, %v3250_v14  ;;  %v3232_v23 = vpack.c.bf16 %v2568_v43, %v2568_v43 }
 0x1b2   : > { %2731 = vst.msk [vmem:[%s4810_s16 + $0xc] sm:$0xf] %vm2727_vm12, %v3234_v2  ;;  %2745 = vst.msk [vmem:[%s4810_s16 + $0x44] sm:$0xf] %vm2727_vm12, %v3248_v55 }
 0x1b3   : > { %2729 = vst.msk [vmem:[%s4810_s16 + $0x4] sm:$0xf] %vm2727_vm12, %v3232_v23 }
 0x1e0   : > { %v3310_v31 = vpop.f32.mrb[4].mxu1 }
 0x1e1   : > { %v3294_v41 = vpop.f32.mrb[4].mxu0  ;;  %v2401_v48 = vadd.f32 %v3310_v31, %v4796_v19  ;;  %v2392_v17 = vpop.f32.mrb[5].mxu1 }
 0x1e2   : > { %v2337_v10 = vadd.f32 %v3294_v41, %v4796_v19  ;;  %v2328_v25 = vpop.f32.mrb[5].mxu0  ;;  %v2393_v7 = vadd.f32 %v4796_v19, %v2392_v17  ;;  %v3311_v18 = vpop.f32.mrb[6].mxu1 }
 0x1e3   : > { %v2461_v6 = vadd.f32 3.0, %v2401_v48  ;;  %v2329_v61 = vadd.f32 %v4796_v19, %v2328_v25  ;;  %v3295_v5 = vpop.f32.mrb[6].mxu0  ;;  %v2404_v13 = vadd.f32 %v3311_v18, %v4796_v19  ;;  %v2395_v4 = vpop.f32.mrb[7].mxu1 }
 0x1e4   : > { %v2445_v37 = vadd.f32 3.0, %v2337_v10  ;;  %v2459_v28 = vadd.f32 3.0, %v2393_v7  ;;  %v2340_v3 = vadd.f32 %v3295_v5, %v4796_v19  ;;  %v2331_v29 = vpop.f32.mrb[7].mxu0  ;;  %v2396_v32 = vadd.f32 %v4796_v19, %v2395_v4 }
 0x1e5   : > { %v2493_v44 = vmax.f32 %v2461_v6, 0.0  ;;  %v2443_v47 = vadd.f32 3.0, %v2329_v61  ;;  %v2462_v0 = vadd.f32 3.0, %v2404_v13  ;;  %v2332_v57 = vadd.f32 %v4796_v19, %v2331_v29 }
 0x1e6   : > { %v2477_v33 = vmax.f32 %v2445_v37, 0.0  ;;  %v2491_v60 = vmax.f32 %v2459_v28, 0.0  ;;  %v2446_v24 = vadd.f32 3.0, %v2340_v3  ;;  %v2460_v27 = vadd.f32 3.0, %v2396_v32 }
 0x1e7   : > { %v2525_v54 = vmin.f32 %v2493_v44, 6.0  ;;  %v2475_v11 = vmax.f32 %v2443_v47, 0.0  ;;  %v2494_v53 = vmax.f32 %v2462_v0, 0.0  ;;  %v2444_v40 = vadd.f32 3.0, %v2332_v57 }
 0x1e8   : > { %v2509_v51 = vmin.f32 %v2477_v33, 6.0  ;;  %v2523_v21 = vmin.f32 %v2491_v60, 6.0  ;;  %v2478_v20 = vmax.f32 %v2446_v24, 0.0  ;;  %v2492_v36 = vmax.f32 %v2460_v27, 0.0 }
 0x1e9   : > { %v2557_v46 = vmul.f32 %v2525_v54, %v2401_v48  ;;  %v2507_v52 = vmin.f32 %v2475_v11, 6.0  ;;  %v2526_v15 = vmin.f32 %v2494_v53, 6.0  ;;  %v2476_v45 = vmax.f32 %v2444_v40, 0.0 }
 0x1ea   : > { %v2541_v26 = vmul.f32 %v2509_v51, %v2337_v10  ;;  %v2555_v9 = vmul.f32 %v2523_v21, %v2393_v7  ;;  %v2510_v39 = vmin.f32 %v2478_v20, 6.0  ;;  %v2524_v35 = vmin.f32 %v2492_v36, 6.0 }
 0x1eb   : > { %v2589_v42 = vmul.f32 0.16666667, %v2557_v46  ;;  %v2539_v50 = vmul.f32 %v2507_v52, %v2329_v61  ;;  %v2558_v12 = vmul.f32 %v2526_v15, %v2404_v13  ;;  %v2508_v59 = vmin.f32 %v2476_v45, 6.0 }
 0x1ec   : > { %v2573_v30 = vmul.f32 0.16666667, %v2541_v26  ;;  %v2587_v34 = vmul.f32 0.16666667, %v2555_v9  ;;  %v2542_v22 = vmul.f32 %v2510_v39, %v2340_v3  ;;  %v2556_v56 = vmul.f32 %v2524_v35, %v2396_v32 }
 0x1ed   : > { %v3253_v8 = vpack.c.bf16 %v2589_v42, %v2589_v42  ;;  %v2571_v38 = vmul.f32 0.16666667, %v2539_v50  ;;  %v2590_v1 = vmul.f32 0.16666667, %v2558_v12  ;;  %v2540_v62 = vmul.f32 %v2508_v59, %v2332_v57 }
 0x1ee   : > { %v3237_v49 = vpack.c.bf16 %v2573_v30, %v2573_v30  ;;  %v3251_v58 = vpack.c.bf16 %v2587_v34, %v2587_v34  ;;  %v2574_v63 = vmul.f32 0.16666667, %v2542_v22  ;;  %v2588_v16 = vmul.f32 0.16666667, %v2556_v56 }
 0x1ef   : > { %2750 = vst.msk [vmem:[%s4810_s16 + $0x58] sm:$0xf] %vm2727_vm12, %v3253_v8  ;;  %v3235_v14 = vpack.c.bf16 %v2571_v38, %v2571_v38  ;;  %v3254_v43 = vpack.c.bf16 %v2590_v1, %v2590_v1  ;;  %v2572_v2 = vmul.f32 0.16666667, %v2540_v62 }
 0x1f0   : > { %2734 = vst.msk [vmem:[%s4810_s16 + $0x18] sm:$0xf] %vm2727_vm12, %v3237_v49  ;;  %2748 = vst.msk [vmem:[%s4810_s16 + $0x50] sm:$0xf] %vm2727_vm12, %v3251_v58  ;;  %v3238_v55 = vpack.c.bf16 %v2574_v63, %v2574_v63  ;;  %v3252_v23 = vpack.c.bf16 %v2588_v16, %v2588_v16 }
 0x1f1   : > { %2732 = vst.msk [vmem:[%s4810_s16 + $0x10] sm:$0xf] %vm2727_vm12, %v3235_v14  ;;  %2751 = vst.msk [vmem:[%s4810_s16 + $0x5c] sm:$0xf] %vm2727_vm12, %v3254_v43  ;;  %v3236_v31 = vpack.c.bf16 %v2572_v2, %v2572_v2 }
 0x1f2   : > { %2735 = vst.msk [vmem:[%s4810_s16 + $0x1c] sm:$0xf] %vm2727_vm12, %v3238_v55  ;;  %2749 = vst.msk [vmem:[%s4810_s16 + $0x54] sm:$0xf] %vm2727_vm12, %v3252_v23 }
 0x1f3   : > { %2733 = vst.msk [vmem:[%s4810_s16 + $0x14] sm:$0xf] %vm2727_vm12, %v3236_v31 }
 0x220   : > { %v3314_v41 = vpop.f32.mrb[8].mxu1 }
 0x221   : > { %v3298_v48 = vpop.f32.mrb[8].mxu0  ;;  %v2417_v17 = vadd.f32 %v3314_v41, %v4796_v19  ;;  %v2408_v10 = vpop.f32.mrb[9].mxu1 }
 0x222   : > { %v2353_v25 = vadd.f32 %v3298_v48, %v4796_v19  ;;  %v2344_v7 = vpop.f32.mrb[9].mxu0  ;;  %v2409_v18 = vadd.f32 %v4796_v19, %v2408_v10  ;;  %v3315_v6 = vpop.f32.mrb[10].mxu1 }
 0x223   : > { %v2465_v61 = vadd.f32 3.0, %v2417_v17  ;;  %v2345_v5 = vadd.f32 %v4796_v19, %v2344_v7  ;;  %v3299_v13 = vpop.f32.mrb[10].mxu0  ;;  %v2420_v4 = vadd.f32 %v3315_v6, %v4796_v19  ;;  %v2411_v37 = vpop.f32.mrb[11].mxu1 }
 0x224   : > { %v2449_v28 = vadd.f32 3.0, %v2353_v25  ;;  %v2463_v3 = vadd.f32 3.0, %v2409_v18  ;;  %v2356_v29 = vadd.f32 %v3299_v13, %v4796_v19  ;;  %v2347_v32 = vpop.f32.mrb[11].mxu0  ;;  %v2412_v44 = vadd.f32 %v4796_v19, %v2411_v37 }
 0x225   : > { %v2497_v47 = vmax.f32 %v2465_v61, 0.0  ;;  %v2447_v0 = vadd.f32 3.0, %v2345_v5  ;;  %v2466_v57 = vadd.f32 3.0, %v2420_v4  ;;  %v2348_v33 = vadd.f32 %v4796_v19, %v2347_v32 }
 0x226   : > { %v2481_v60 = vmax.f32 %v2449_v28, 0.0  ;;  %v2495_v24 = vmax.f32 %v2463_v3, 0.0  ;;  %v2450_v27 = vadd.f32 3.0, %v2356_v29  ;;  %v2464_v54 = vadd.f32 3.0, %v2412_v44 }
 0x227   : > { %v2529_v11 = vmin.f32 %v2497_v47, 6.0  ;;  %v2479_v53 = vmax.f32 %v2447_v0, 0.0  ;;  %v2498_v40 = vmax.f32 %v2466_v57, 0.0  ;;  %v2448_v51 = vadd.f32 3.0, %v2348_v33 }
 0x228   : > { %v2513_v21 = vmin.f32 %v2481_v60, 6.0  ;;  %v2527_v20 = vmin.f32 %v2495_v24, 6.0  ;;  %v2482_v36 = vmax.f32 %v2450_v27, 0.0  ;;  %v2496_v46 = vmax.f32 %v2464_v54, 0.0 }
 0x229   : > { %v2561_v52 = vmul.f32 %v2529_v11, %v2417_v17  ;;  %v2511_v15 = vmin.f32 %v2479_v53, 6.0  ;;  %v2530_v45 = vmin.f32 %v2498_v40, 6.0  ;;  %v2480_v26 = vmax.f32 %v2448_v51, 0.0 }
 0x22a   : > { %v2545_v9 = vmul.f32 %v2513_v21, %v2353_v25  ;;  %v2559_v39 = vmul.f32 %v2527_v20, %v2409_v18  ;;  %v2514_v35 = vmin.f32 %v2482_v36, 6.0  ;;  %v2528_v42 = vmin.f32 %v2496_v46, 6.0 }
 0x22b   : > { %v2593_v50 = vmul.f32 0.16666667, %v2561_v52  ;;  %v2543_v12 = vmul.f32 %v2511_v15, %v2345_v5  ;;  %v2562_v59 = vmul.f32 %v2530_v45, %v2420_v4  ;;  %v2512_v30 = vmin.f32 %v2480_v26, 6.0 }
 0x22c   : > { %v2577_v34 = vmul.f32 0.16666667, %v2545_v9  ;;  %v2591_v22 = vmul.f32 0.16666667, %v2559_v39  ;;  %v2546_v56 = vmul.f32 %v2514_v35, %v2356_v29  ;;  %v2560_v8 = vmul.f32 %v2528_v42, %v2412_v44 }
 0x22d   : > { %v3257_v38 = vpack.c.bf16 %v2593_v50, %v2593_v50  ;;  %v2575_v1 = vmul.f32 0.16666667, %v2543_v12  ;;  %v2594_v62 = vmul.f32 0.16666667, %v2562_v59  ;;  %v2544_v49 = vmul.f32 %v2512_v30, %v2348_v33 }
 0x22e   : > { %v3241_v58 = vpack.c.bf16 %v2577_v34, %v2577_v34  ;;  %v3255_v63 = vpack.c.bf16 %v2591_v22, %v2591_v22  ;;  %v2578_v16 = vmul.f32 0.16666667, %v2546_v56  ;;  %v2592_v14 = vmul.f32 0.16666667, %v2560_v8 }
 0x22f   : > { %2754 = vst.msk [vmem:[%s4810_s16 + $0x68] sm:$0xf] %vm2727_vm12, %v3257_v38  ;;  %v3239_v43 = vpack.c.bf16 %v2575_v1, %v2575_v1  ;;  %v3258_v2 = vpack.c.bf16 %v2594_v62, %v2594_v62  ;;  %v2576_v55 = vmul.f32 0.16666667, %v2544_v49 }
 0x230   : > { %2738 = vst.msk [vmem:[%s4810_s16 + $0x28] sm:$0xf] %vm2727_vm12, %v3241_v58  ;;  %2752 = vst.msk [vmem:[%s4810_s16 + $0x60] sm:$0xf] %vm2727_vm12, %v3255_v63  ;;  %v3242_v23 = vpack.c.bf16 %v2578_v16, %v2578_v16  ;;  %v3256_v31 = vpack.c.bf16 %v2592_v14, %v2592_v14 }
 0x231   : > { %2736 = vst.msk [vmem:[%s4810_s16 + $0x20] sm:$0xf] %vm2727_vm12, %v3239_v43  ;;  %2755 = vst.msk [vmem:[%s4810_s16 + $0x6c] sm:$0xf] %vm2727_vm12, %v3258_v2  ;;  %v3240_v41 = vpack.c.bf16 %v2576_v55, %v2576_v55 }
 0x232   : > { %2739 = vst.msk [vmem:[%s4810_s16 + $0x2c] sm:$0xf] %vm2727_vm12, %v3242_v23  ;;  %2753 = vst.msk [vmem:[%s4810_s16 + $0x64] sm:$0xf] %vm2727_vm12, %v3256_v31 }
 0x233   : > { %2737 = vst.msk [vmem:[%s4810_s16 + $0x24] sm:$0xf] %vm2727_vm12, %v3240_v41 }
 0x25c   : > { %v3318_v48 = vpop.f32.mrb[12].mxu1 }
 0x25d   : > { %v3302_v17 = vpop.f32.mrb[12].mxu0  ;;  %v2433_v10 = vadd.f32 %v3318_v48, %v4796_v19  ;;  %v2424_v25 = vpop.f32.mrb[13].mxu1 }
 0x25e   : > { %v2369_v7 = vadd.f32 %v3302_v17, %v4796_v19  ;;  %v2360_v18 = vpop.f32.mrb[13].mxu0  ;;  %v2425_v6 = vadd.f32 %v4796_v19, %v2424_v25  ;;  %v3319_v61 = vpop.f32.mrb[14].mxu1 }
 0x25f   : > { %v2469_v5 = vadd.f32 3.0, %v2433_v10  ;;  %v2361_v13 = vadd.f32 %v4796_v19, %v2360_v18  ;;  %v3303_v4 = vpop.f32.mrb[14].mxu0  ;;  %v2436_v37 = vadd.f32 %v3319_v61, %v4796_v19  ;;  %v2427_v28 = vpop.f32.mrb[15].mxu1 }
 0x260   : > { %v2453_v3 = vadd.f32 3.0, %v2369_v7  ;;  %v2467_v29 = vadd.f32 3.0, %v2425_v6  ;;  %v2372_v32 = vadd.f32 %v3303_v4, %v4796_v19  ;;  %v2363_v44 = vpop.f32.mrb[15].mxu0  ;;  %v2428_v47 = vadd.f32 %v4796_v19, %v2427_v28 }
 0x261   : > { %v2501_v0 = vmax.f32 %v2469_v5, 0.0  ;;  %v2451_v57 = vadd.f32 3.0, %v2361_v13  ;;  %v2470_v33 = vadd.f32 3.0, %v2436_v37  ;;  %v2364_v60 = vadd.f32 %v4796_v19, %v2363_v44 }
 0x262   : > { %v2485_v24 = vmax.f32 %v2453_v3, 0.0  ;;  %v2499_v27 = vmax.f32 %v2467_v29, 0.0  ;;  %v2454_v54 = vadd.f32 3.0, %v2372_v32  ;;  %v2468_v11 = vadd.f32 3.0, %v2428_v47 }
 0x263   : > { %v2533_v53 = vmin.f32 %v2501_v0, 6.0  ;;  %v2483_v40 = vmax.f32 %v2451_v57, 0.0  ;;  %v2502_v51 = vmax.f32 %v2470_v33, 0.0  ;;  %v2452_v21 = vadd.f32 3.0, %v2364_v60 }
 0x264   : > { %v2517_v20 = vmin.f32 %v2485_v24, 6.0  ;;  %v2531_v36 = vmin.f32 %v2499_v27, 6.0  ;;  %v2486_v46 = vmax.f32 %v2454_v54, 0.0  ;;  %v2500_v52 = vmax.f32 %v2468_v11, 0.0 }
 0x265   : > { %v2565_v15 = vmul.f32 %v2533_v53, %v2433_v10  ;;  %v2515_v45 = vmin.f32 %v2483_v40, 6.0  ;;  %v2534_v26 = vmin.f32 %v2502_v51, 6.0  ;;  %v2484_v9 = vmax.f32 %v2452_v21, 0.0 }
 0x266   : > { %v2549_v39 = vmul.f32 %v2517_v20, %v2369_v7  ;;  %v2563_v35 = vmul.f32 %v2531_v36, %v2425_v6  ;;  %v2518_v42 = vmin.f32 %v2486_v46, 6.0  ;;  %v2532_v19 = vmin.f32 %v2500_v52, 6.0 }
 0x267   : > { %v2597_v50 = vmul.f32 0.16666667, %v2565_v15  ;;  %v2547_v12 = vmul.f32 %v2515_v45, %v2361_v13  ;;  %v2566_v59 = vmul.f32 %v2534_v26, %v2436_v37  ;;  %v2516_v30 = vmin.f32 %v2484_v9, 6.0 }
 0x268   : > { %v2581_v34 = vmul.f32 0.16666667, %v2549_v39  ;;  %v2595_v22 = vmul.f32 0.16666667, %v2563_v35  ;;  %v2550_v56 = vmul.f32 %v2518_v42, %v2372_v32  ;;  %v2564_v8 = vmul.f32 %v2532_v19, %v2428_v47 }
 0x269   : > { %v3261_v38 = vpack.c.bf16 %v2597_v50, %v2597_v50  ;;  %v2579_v1 = vmul.f32 0.16666667, %v2547_v12  ;;  %v2598_v62 = vmul.f32 0.16666667, %v2566_v59  ;;  %v2548_v49 = vmul.f32 %v2516_v30, %v2364_v60 }
 0x26a   : > { %v3245_v58 = vpack.c.bf16 %v2581_v34, %v2581_v34  ;;  %v3259_v63 = vpack.c.bf16 %v2595_v22, %v2595_v22  ;;  %v2582_v16 = vmul.f32 0.16666667, %v2550_v56  ;;  %v2596_v14 = vmul.f32 0.16666667, %v2564_v8 }
 0x26b   : > { %2758 = vst.msk [vmem:[%s4810_s16 + $0x78] sm:$0xf] %vm2727_vm12, %v3261_v38  ;;  %v3243_v43 = vpack.c.bf16 %v2579_v1, %v2579_v1  ;;  %v3262_v2 = vpack.c.bf16 %v2598_v62, %v2598_v62  ;;  %v2580_v55 = vmul.f32 0.16666667, %v2548_v49 }
 0x26c   : > { %2742 = vst.msk [vmem:[%s4810_s16 + $0x38] sm:$0xf] %vm2727_vm12, %v3245_v58  ;;  %2756 = vst.msk [vmem:[%s4810_s16 + $0x70] sm:$0xf] %vm2727_vm12, %v3259_v63  ;;  %v3246_v23 = vpack.c.bf16 %v2582_v16, %v2582_v16  ;;  %v3260_v31 = vpack.c.bf16 %v2596_v14, %v2596_v14 }
 0x26d   : > { %2740 = vst.msk [vmem:[%s4810_s16 + $0x30] sm:$0xf] %vm2727_vm12, %v3243_v43  ;;  %2759 = vst.msk [vmem:[%s4810_s16 + $0x7c] sm:$0xf] %vm2727_vm12, %v3262_v2  ;;  %v3244_v41 = vpack.c.bf16 %v2580_v55, %v2580_v55 }
 0x26e   : > { %2743 = vst.msk [vmem:[%s4810_s16 + $0x3c] sm:$0xf] %vm2727_vm12, %v3246_v23  ;;  %2757 = vst.msk [vmem:[%s4810_s16 + $0x74] sm:$0xf] %vm2727_vm12, %v3260_v31 }
 0x26f   : > { %2741 = vst.msk [vmem:[%s4810_s16 + $0x34] sm:$0xf] %vm2727_vm12, %v3244_v41 }
 0x270 PF: > { %s13_s14 = sadd.s32 1, %s3530_s14   ;;  %s4925_s12 = smov %s3526_s13 }
 0x271   : > { %p10_p5 = scmp.ge.s32.totalorder %s13_s14, 4   ;;  %s4926_s13 = smov %s4928_s15 }
 0x273   :  { %12 = sbr.rel (!%p10_p5) target bundleno = 2 (0x2), region = 71 }

</bundles_post_ra>
